<compile_context>
chip_gen: v7x
topology: tpu7x:2x2x1
jax: 0.10.0
libtpu: 0.0.40
codegen_flags: <defaults>
</compile_context>

<pallas_src>
import functools

import jax
import jax.numpy as jnp
from jax.experimental import pallas as pl
from jax.experimental.pallas import tpu as pltpu


# ----------------------------- Pallas kernel --------------------------------

def _matmul_bias_lrelu_kernel(a_ref, w_ref, b_ref, o_ref):
    # A/W arrive as bf16; accumulate in f32 on the MXU, then bias +
    # LeakyReLU(0.1) in f32 and cast on the final store (bf16 for conv
    # activations, f32 for the FC output).
    acc = jnp.dot(a_ref[...], w_ref[...], preferred_element_type=jnp.float32)
    acc = acc + b_ref[...]
    o_ref[...] = jnp.where(acc > 0, acc, 0.1 * acc).astype(o_ref.dtype)


def _round_up(x, m):
    return (x + m - 1) // m * m


@functools.lru_cache()
def _vmem_params():
    """(vmem_limit_bytes, tile_budget_bytes) for the current TPU generation."""
    try:
        cap = int(pltpu.get_tpu_info().vmem_capacity_bytes)
    except Exception:
        cap = 64 << 20            # assume v7x (smallest VMEM) if query fails
    limit = min(cap // 2, 96 << 20)   # 32 MiB on v7x, 64 MiB on v5e/v6e
    budget = int(limit * 0.65)        # headroom for compiler-internal scratch
    return limit, budget


def _choose_tm(m, kp, n, out_itemsize, budget_bytes):
    """Largest 16-aligned M tile fitting the VMEM budget.

    Prefers a tile giving >= 2 grid steps (the grid axis is "parallel", so
    v7x's two TensorCores split it); otherwise a single full-M block.
    """
    mp16 = _round_up(m, 16)

    def vmem(tm):
        # bf16 A tile (double-buffered) + bf16 weight + f32 bias + out tile.
        # Weight/bias blocks have a constant index_map so they are only DMA'd
        # once, but their (double) buffers are still allocated.
        # TODO(synk): pipeline_mode=pl.Buffered(1) on the weight would reclaim
        #             the unused second buffer at large fc_in.
        return (2 * tm * kp * 2 + 2 * kp * n * 2 + 2 * n * 4
                + 2 * tm * n * out_itemsize)

    cands = [t for t in (2048, 1024, 512, 256, 128, 64, 32, 16) if t <= mp16]
    if not cands:
        cands = [16]
    fitting = [t for t in cands if vmem(t) <= budget_bytes] or [16]
    multi = [t for t in fitting if mp16 > t]      # ceil(mp16 / t) >= 2
    return multi[0] if multi else fitting[0]


def matmul_bias_lrelu(a, w, b, out_dtype=jnp.float32):
    """leaky_relu(a @ w + b, 0.1) on the MXU.

    a: [M, K], w: [K, N], b: [N]  ->  [M, N] in `out_dtype`.
    A/W are cast to bf16 (native MXU rate, half the DMA bytes); bias and the
    LeakyReLU epilogue stay f32.  K is zero-padded to a multiple of 16 (bf16
    sublane pack) and M to a multiple of the chosen row tile; N is kept exact
    (block last dim == full array dim), avoiding padded writebacks and the
    post-kernel column-slice copy.
    """
    M, K = a.shape
    Kw, N = w.shape
    assert K == Kw and b.shape == (N,)

    Kp = _round_up(K, 16)
    out_itemsize = jnp.dtype(out_dtype).itemsize
    limit, budget = _vmem_params()
    tm = _choose_tm(M, Kp, N, out_itemsize, budget)
    Mp = _round_up(M, tm)
    grid = (Mp // tm,)

    a_p = jnp.pad(a.astype(jnp.bfloat16), ((0, Mp - M), (0, Kp - K)))
    w_p = jnp.pad(w.astype(jnp.bfloat16), ((0, Kp - K), (0, 0)))
    b_p = b.astype(jnp.float32).reshape(1, N)

    out = pl.pallas_call(
        _matmul_bias_lrelu_kernel,
        out_shape=jax.ShapeDtypeStruct((Mp, N), out_dtype),
        grid=grid,
        in_specs=[
            pl.BlockSpec((tm, Kp), lambda i: (i, 0)),
            pl.BlockSpec((Kp, N), lambda i: (0, 0)),   # constant: fetched once
            pl.BlockSpec((1, N), lambda i: (0, 0)),    # constant: fetched once
        ],
        out_specs=pl.BlockSpec((tm, N), lambda i: (i, 0)),
        compiler_params=pltpu.CompilerParams(
            dimension_semantics=("parallel",),
            vmem_limit_bytes=limit),
    )(a_p, w_p, b_p)
    return out[:M] if Mp != M else out


# ------------------------------ JAX glue ------------------------------------

def im2col_3d(x):
    """x: [N, D, H, W, C] -> [N*D*H*W, 27*C] patches for a 3x3x3, pad=1 conv.

    Patch ordering is (kd, kh, kw, cin), matching conv_weight_to_matmul.
    Input is expected in bf16 so the materialized patch matrix is bf16.
    """
    # TODO(synk): fold im2col into the conv kernel (halo DMA + 27 shifted
    # matmuls into a VMEM accumulator) to remove the 27x HBM read
    # amplification at large fmri_dims.
    N, D, H, W, C = x.shape
    xp = jnp.pad(x, ((0, 0), (1, 1), (1, 1), (1, 1), (0, 0)))
    patches = []
    for kd in range(3):
        for kh in range(3):
            for kw in range(3):
                patches.append(xp[:, kd:kd + D, kh:kh + H, kw:kw + W, :])
    p = jnp.stack(patches, axis=4)            # [N, D, H, W, 27, C]
    return p.reshape(N * D * H * W, 27 * C)


def conv_weight_to_matmul(w):
    """PyTorch Conv3d weight [Cout, Cin, 3, 3, 3] -> [27*Cin, Cout]."""
    cout, cin = w.shape[0], w.shape[1]
    return jnp.transpose(w, (2, 3, 4, 1, 0)).reshape(27 * cin, cout)


def maxpool3d_2(x):
    """MaxPool3d(2, 2) on [N, D, H, W, C]; D, H, W even at each call site.

    Three pairwise maxima over strided slices; XLA fuses them with the
    surrounding reshapes (no dedicated kernel launch / HBM round-trip).
    """
    x = jnp.maximum(x[:, 0::2], x[:, 1::2])
    x = jnp.maximum(x[:, :, 0::2], x[:, :, 1::2])
    x = jnp.maximum(x[:, :, :, 0::2], x[:, :, :, 1::2])
    return x


@jax.jit
def _encoder_forward_arrays(x_ncdhw, w1, b1, w2, b2, wfc, bfc):
    N, C0, D, H, W = x_ncdhw.shape
    # NCDHW -> NDHWC, cast to bf16 up front so the im2col patch matrix (the
    # largest HBM intermediate) is bf16.
    x = jnp.transpose(x_ncdhw, (0, 2, 3, 4, 1)).astype(jnp.bfloat16)

    # conv1 (3x3x3, pad=1) + LeakyReLU(0.1); activation stored as bf16.
    a1 = im2col_3d(x)                                    # [N*D*H*W, 27] bf16
    y = matmul_bias_lrelu(a1, conv_weight_to_matmul(w1), b1,
                          out_dtype=jnp.bfloat16)
    y = y.reshape(N, D, H, W, 32)

    # MaxPool3d(2, 2, ceil_mode=True)  (dims divisible by 2 at this stage)
    y = maxpool3d_2(y)                                   # [N, D/2, H/2, W/2, 32]

    # Dropout(p=0.25): identity in eval mode.
    # TODO(synk): training-mode dropout (pltpu.prng_seed/prng_random_bits mask).

    # conv2 (3x3x3, pad=1) + LeakyReLU(0.1); activation stored as bf16.
    D2, H2, W2 = D // 2, H // 2, W // 2
    a2 = im2col_3d(y)                                    # [N*D2*H2*W2, 27*32] bf16
    y2 = matmul_bias_lrelu(a2, conv_weight_to_matmul(w2), b2,
                           out_dtype=jnp.bfloat16)
    y2 = y2.reshape(N, D2, H2, W2, 64)

    # MaxPool3d(2, 2, ceil_mode=True)
    y2 = maxpool3d_2(y2)                                 # [N, D/4, H/4, W/4, 64]

    # Flatten in PyTorch NCDHW order, then fc_encoder + LeakyReLU(0.1) (f32 out).
    flat = jnp.transpose(y2, (0, 4, 1, 2, 3)).reshape(N, -1)
    z = matmul_bias_lrelu(flat, jnp.transpose(wfc), bfc, out_dtype=jnp.float32)

    hidden_rep = jax.lax.stop_gradient(z)                # x.clone().detach()
    return z, hidden_rep


def encoder_conv_forward(x_ncdhw, w1, b1, w2, b2, wfc, bfc):
    """Reproduces Encoder_conv.forward -> (x, hidden_rep, compressed_shape)."""
    N, _, D, H, W = x_ncdhw.shape
    if any(s % 4 != 0 for s in (D, H, W)):
        # TODO(synk): ceil_mode=True pooling path for dims not divisible by 4.
        raise NotImplementedError("spatial dims must be divisible by 4")
    z, hidden_rep = _encoder_forward_arrays(x_ncdhw, w1, b1, w2, b2, wfc, bfc)
    compressed_shape = (N, 64, D // 4, H // 4, W // 4)   # NCDHW x.size() after pool2
    return z, hidden_rep, compressed_shape


# ----------------------- pure-JAX reference (f32) ----------------------------

def _reference_forward(x, w1, b1, w2, b2, wfc, bfc):
    hi = jax.lax.Precision.HIGHEST

    def conv3(v, w, b):
        y = jax.lax.conv_general_dilated(
            v, w, window_strides=(1, 1, 1), padding=((1, 1),) * 3,
            dimension_numbers=("NCDHW", "OIDHW", "NCDHW"), precision=hi)
        return y + b.reshape(1, -1, 1, 1, 1)

    def lrelu(v):
        return jnp.where(v > 0, v, 0.1 * v)

    def pool(v):  # NCDHW, even dims
        v = jnp.maximum(v[:, :, 0::2], v[:, :, 1::2])
        v = jnp.maximum(v[:, :, :, 0::2], v[:, :, :, 1::2])
        v = jnp.maximum(v[:, :, :, :, 0::2], v[:, :, :, :, 1::2])
        return v

    y = pool(lrelu(conv3(x, w1, b1)))
    y = pool(lrelu(conv3(y, w2, b2)))
    flat = y.reshape(y.shape[0], -1)
    return lrelu(jnp.dot(flat, wfc.T, precision=hi) + bfc)


# --------------------------------- main --------------------------------------

if __name__ == "__main__":
    fmri_dims = (8, 8, 8)          # each dim divisible by 4
    latent_dim = 32
    batch = 2

    n_voxels_conv2_output = (fmri_dims[0] // 4) * (fmri_dims[1] // 4) * (fmri_dims[2] // 4)
    fc_in = 64 * n_voxels_conv2_output

    key = jax.random.PRNGKey(0)
    k_x, k_w1, k_b1, k_w2, k_b2, k_wf, k_bf = jax.random.split(key, 7)

    # PyTorch-convention parameter shapes, deterministic synthetic init.
    x = jax.random.normal(k_x, (batch, 1) + fmri_dims, jnp.float32)
    w1 = jax.random.normal(k_w1, (32, 1, 3, 3, 3), jnp.float32) * 0.10
    b1 = jax.random.normal(k_b1, (32,), jnp.float32) * 0.10
    w2 = jax.random.normal(k_w2, (64, 32, 3, 3, 3), jnp.float32) * 0.05
    b2 = jax.random.normal(k_b2, (64,), jnp.float32) * 0.05
    wfc = jax.random.normal(k_wf, (latent_dim, fc_in), jnp.float32) * 0.02
    bfc = jax.random.normal(k_bf, (latent_dim,), jnp.float32) * 0.02

    out, hidden_rep, compressed_shape = encoder_conv_forward(
        x, w1, b1, w2, b2, wfc, bfc)
    jax.block_until_ready(out)
    jax.block_until_ready(hidden_rep)

    assert out.shape == (batch, latent_dim)
    assert hidden_rep.shape == (batch, latent_dim)
    assert compressed_shape == (batch, 64, 2, 2, 2)
    assert bool(jnp.all(jnp.isfinite(out)))

    # Tolerance check vs. the f32 reference (operands are bf16 on the MXU,
    # so expect ~1e-2 absolute error at these magnitudes).
    ref = _reference_forward(x, w1, b1, w2, b2, wfc, bfc)
    max_err = float(jnp.max(jnp.abs(out - ref)))
    tol = 5e-2 + 5e-2 * float(jnp.max(jnp.abs(ref)))
    assert max_err <= tol, f"max_err={max_err} > tol={tol}"

    print("KERNEL_OK")
</pallas_src>

<mosaic_0001>
module attributes {stable_mosaic.version = 11 : i64} {
  func.func @_matmul_bias_lrelu_kernel(%arg0: i32, %arg1: memref<512x32xbf16, #tpu.memory_space<vmem>>, %arg2: memref<32x32xbf16, #tpu.memory_space<vmem>>, %arg3: memref<1x32xf32, #tpu.memory_space<vmem>>, %arg4: memref<512x32xbf16, #tpu.memory_space<vmem>>) attributes {dimension_semantics = [#tpu.dimension_semantics<parallel>], iteration_bounds = array<i64: 2>, scalar_prefetch = 0 : i64, scratch_operands = 0 : i64, tpu.core_type = #tpu.core_type<tc>, window_params = [{transform_indices = @transform_0, window_bounds = array<i64: 512, 32>}, {pipeline_mode = #tpu.pipeline_mode<synchronous>, transform_indices = @transform_1, window_bounds = array<i64: 32, 32>}, {pipeline_mode = #tpu.pipeline_mode<synchronous>, transform_indices = @transform_2, window_bounds = array<i64: 1, 32>}, {transform_indices = @transform_3, window_bounds = array<i64: 512, 32>}]} {
    %c0 = arith.constant 0 : index
    %c0_0 = arith.constant 0 : index
    %0 = vector.load %arg1[%c0, %c0_0] : memref<512x32xbf16, #tpu.memory_space<vmem>>, vector<512x32xbf16>
    %c0_1 = arith.constant 0 : index
    %c0_2 = arith.constant 0 : index
    %1 = vector.load %arg2[%c0_1, %c0_2] : memref<32x32xbf16, #tpu.memory_space<vmem>>, vector<32x32xbf16>
    %cst = arith.constant dense<0.000000e+00> : vector<512x32xf32>
    %2 = tpu.matmul %0, %1, %cst {dimension_numbers = #tpu.dot_dimension_numbers<[1], [0], [0], [1], [0, 0, 1, 1], [], []>} : vector<512x32xbf16>, vector<32x32xbf16>, vector<512x32xf32> -> vector<512x32xf32>
    %c0_3 = arith.constant 0 : index
    %c0_4 = arith.constant 0 : index
    %3 = vector.load %arg3[%c0_3, %c0_4] : memref<1x32xf32, #tpu.memory_space<vmem>>, vector<1x32xf32>
    %4 = vector.broadcast %3 : vector<1x32xf32> to vector<512x32xf32>
    %5 = arith.addf %2, %4 : vector<512x32xf32>
    %cst_5 = arith.constant 0.000000e+00 : f32
    %6 = vector.broadcast %cst_5 : f32 to vector<512x32xf32>
    %7 = arith.cmpf ogt, %5, %6 : vector<512x32xf32>
    %cst_6 = arith.constant 1.000000e-01 : f32
    %8 = vector.broadcast %cst_6 : f32 to vector<512x32xf32>
    %9 = arith.mulf %8, %5 : vector<512x32xf32>
    %10 = arith.select %7, %5, %9 : vector<512x32xi1>, vector<512x32xf32>
    %11 = arith.truncf %10 : vector<512x32xf32> to vector<512x32xbf16>
    %c0_7 = arith.constant 0 : index
    %c0_8 = arith.constant 0 : index
    %12 = vector.load %arg4[%c0_7, %c0_8] : memref<512x32xbf16, #tpu.memory_space<vmem>>, vector<512x32xbf16>
    tpu.vector_store %arg4[%c0_7, %c0_8], %11 {strides = array<i32>} : memref<512x32xbf16, #tpu.memory_space<vmem>>, vector<512x32xbf16>,
    return
  }
  func.func @transform_0(%arg0: i32) -> (i32, i32) {
    %c0_i32 = arith.constant 0 : i32
    %c0_i32_0 = arith.constant 0 : i32
    return %arg0, %c0_i32 : i32, i32
  }
  func.func @transform_1(%arg0: i32) -> (i32, i32) {
    %c0_i32 = arith.constant 0 : i32
    %c0_i32_0 = arith.constant 0 : i32
    %c0_i32_1 = arith.constant 0 : i32
    return %c0_i32, %c0_i32_0 : i32, i32
  }
  func.func @transform_2(%arg0: i32) -> (i32, i32) {
    %c0_i32 = arith.constant 0 : i32
    %c0_i32_0 = arith.constant 0 : i32
    %c0_i32_1 = arith.constant 0 : i32
    return %c0_i32, %c0_i32_0 : i32, i32
  }
  func.func @transform_3(%arg0: i32) -> (i32, i32) {
    %c0_i32 = arith.constant 0 : i32
    %c0_i32_0 = arith.constant 0 : i32
    return %arg0, %c0_i32 : i32, i32
  }
}

module attributes {stable_mosaic.version = 11 : i64} {
  func.func @_matmul_bias_lrelu_kernel(%arg0: i32, %arg1: memref<64x864xbf16, #tpu.memory_space<vmem>>, %arg2: memref<864x64xbf16, #tpu.memory_space<vmem>>, %arg3: memref<1x64xf32, #tpu.memory_space<vmem>>, %arg4: memref<64x64xbf16, #tpu.memory_space<vmem>>) attributes {dimension_semantics = [#tpu.dimension_semantics<parallel>], iteration_bounds = array<i64: 2>, scalar_prefetch = 0 : i64, scratch_operands = 0 : i64, tpu.core_type = #tpu.core_type<tc>, window_params = [{transform_indices = @transform_0, window_bounds = array<i64: 64, 864>}, {pipeline_mode = #tpu.pipeline_mode<synchronous>, transform_indices = @transform_1, window_bounds = array<i64: 864, 64>}, {pipeline_mode = #tpu.pipeline_mode<synchronous>, transform_indices = @transform_2, window_bounds = array<i64: 1, 64>}, {transform_indices = @transform_3, window_bounds = array<i64: 64, 64>}]} {
    %c0 = arith.constant 0 : index
    %c0_0 = arith.constant 0 : index
    %0 = vector.load %arg1[%c0, %c0_0] : memref<64x864xbf16, #tpu.memory_space<vmem>>, vector<64x864xbf16>
    %c0_1 = arith.constant 0 : index
    %c0_2 = arith.constant 0 : index
    %1 = vector.load %arg2[%c0_1, %c0_2] : memref<864x64xbf16, #tpu.memory_space<vmem>>, vector<864x64xbf16>
    %cst = arith.constant dense<0.000000e+00> : vector<64x64xf32>
    %2 = tpu.matmul %0, %1, %cst {dimension_numbers = #tpu.dot_dimension_numbers<[1], [0], [0], [1], [0, 0, 1, 1], [], []>} : vector<64x864xbf16>, vector<864x64xbf16>, vector<64x64xf32> -> vector<64x64xf32>
    %c0_3 = arith.constant 0 : index
    %c0_4 = arith.constant 0 : index
    %3 = vector.load %arg3[%c0_3, %c0_4] : memref<1x64xf32, #tpu.memory_space<vmem>>, vector<1x64xf32>
    %4 = vector.broadcast %3 : vector<1x64xf32> to vector<64x64xf32>
    %5 = arith.addf %2, %4 : vector<64x64xf32>
    %cst_5 = arith.constant 0.000000e+00 : f32
    %6 = vector.broadcast %cst_5 : f32 to vector<64x64xf32>
    %7 = arith.cmpf ogt, %5, %6 : vector<64x64xf32>
    %cst_6 = arith.constant 1.000000e-01 : f32
    %8 = vector.broadcast %cst_6 : f32 to vector<64x64xf32>
    %9 = arith.mulf %8, %5 : vector<64x64xf32>
    %10 = arith.select %7, %5, %9 : vector<64x64xi1>, vector<64x64xf32>
    %11 = arith.truncf %10 : vector<64x64xf32> to vector<64x64xbf16>
    %c0_7 = arith.constant 0 : index
    %c0_8 = arith.constant 0 : index
    %12 = vector.load %arg4[%c0_7, %c0_8] : memref<64x64xbf16, #tpu.memory_space<vmem>>, vector<64x64xbf16>
    tpu.vector_store %arg4[%c0_7, %c0_8], %11 {strides = array<i32>} : memref<64x64xbf16, #tpu.memory_space<vmem>>, vector<64x64xbf16>,
    return
  }
  func.func @transform_0(%arg0: i32) -> (i32, i32) {
    %c0_i32 = arith.constant 0 : i32
    %c0_i32_0 = arith.constant 0 : i32
    return %arg0, %c0_i32 : i32, i32
  }
  func.func @transform_1(%arg0: i32) -> (i32, i32) {
    %c0_i32 = arith.constant 0 : i32
    %c0_i32_0 = arith.constant 0 : i32
    %c0_i32_1 = arith.constant 0 : i32
    return %c0_i32, %c0_i32_0 : i32, i32
  }
  func.func @transform_2(%arg0: i32) -> (i32, i32) {
    %c0_i32 = arith.constant 0 : i32
    %c0_i32_0 = arith.constant 0 : i32
    %c0_i32_1 = arith.constant 0 : i32
    return %c0_i32, %c0_i32_0 : i32, i32
  }
  func.func @transform_3(%arg0: i32) -> (i32, i32) {
    %c0_i32 = arith.constant 0 : i32
    %c0_i32_0 = arith.constant 0 : i32
    return %arg0, %c0_i32 : i32, i32
  }
}

module attributes {stable_mosaic.version = 11 : i64} {
  func.func @_matmul_bias_lrelu_kernel(%arg0: i32, %arg1: memref<16x512xbf16, #tpu.memory_space<vmem>>, %arg2: memref<512x32xbf16, #tpu.memory_space<vmem>>, %arg3: memref<1x32xf32, #tpu.memory_space<vmem>>, %arg4: memref<16x32xf32, #tpu.memory_space<vmem>>) attributes {dimension_semantics = [#tpu.dimension_semantics<parallel>], iteration_bounds = array<i64: 1>, scalar_prefetch = 0 : i64, scratch_operands = 0 : i64, tpu.core_type = #tpu.core_type<tc>, window_params = [{transform_indices = @transform_0, window_bounds = array<i64: 16, 512>}, {pipeline_mode = #tpu.pipeline_mode<synchronous>, transform_indices = @transform_1, window_bounds = array<i64: 512, 32>}, {pipeline_mode = #tpu.pipeline_mode<synchronous>, transform_indices = @transform_2, window_bounds = array<i64: 1, 32>}, {transform_indices = @transform_3, window_bounds = array<i64: 16, 32>}]} {
    %c0 = arith.constant 0 : index
    %c0_0 = arith.constant 0 : index
    %0 = vector.load %arg1[%c0, %c0_0] : memref<16x512xbf16, #tpu.memory_space<vmem>>, vector<16x512xbf16>
    %c0_1 = arith.constant 0 : index
    %c0_2 = arith.constant 0 : index
    %1 = vector.load %arg2[%c0_1, %c0_2] : memref<512x32xbf16, #tpu.memory_space<vmem>>, vector<512x32xbf16>
    %cst = arith.constant dense<0.000000e+00> : vector<16x32xf32>
    %2 = tpu.matmul %0, %1, %cst {dimension_numbers = #tpu.dot_dimension_numbers<[1], [0], [0], [1], [0, 0, 1, 1], [], []>} : vector<16x512xbf16>, vector<512x32xbf16>, vector<16x32xf32> -> vector<16x32xf32>
    %c0_3 = arith.constant 0 : index
    %c0_4 = arith.constant 0 : index
    %3 = vector.load %arg3[%c0_3, %c0_4] : memref<1x32xf32, #tpu.memory_space<vmem>>, vector<1x32xf32>
    %4 = vector.broadcast %3 : vector<1x32xf32> to vector<16x32xf32>
    %5 = arith.addf %2, %4 : vector<16x32xf32>
    %cst_5 = arith.constant 0.000000e+00 : f32
    %6 = vector.broadcast %cst_5 : f32 to vector<16x32xf32>
    %7 = arith.cmpf ogt, %5, %6 : vector<16x32xf32>
    %cst_6 = arith.constant 1.000000e-01 : f32
    %8 = vector.broadcast %cst_6 : f32 to vector<16x32xf32>
    %9 = arith.mulf %8, %5 : vector<16x32xf32>
    %10 = arith.select %7, %5, %9 : vector<16x32xi1>, vector<16x32xf32>
    %c0_7 = arith.constant 0 : index
    %c0_8 = arith.constant 0 : index
    %11 = vector.load %arg4[%c0_7, %c0_8] : memref<16x32xf32, #tpu.memory_space<vmem>>, vector<16x32xf32>
    tpu.vector_store %arg4[%c0_7, %c0_8], %10 {strides = array<i32>} : memref<16x32xf32, #tpu.memory_space<vmem>>, vector<16x32xf32>,
    return
  }
  func.func @transform_0(%arg0: i32) -> (i32, i32) {
    %c0_i32 = arith.constant 0 : i32
    %c0_i32_0 = arith.constant 0 : i32
    return %arg0, %c0_i32 : i32, i32
  }
  func.func @transform_1(%arg0: i32) -> (i32, i32) {
    %c0_i32 = arith.constant 0 : i32
    %c0_i32_0 = arith.constant 0 : i32
    %c0_i32_1 = arith.constant 0 : i32
    return %c0_i32, %c0_i32_0 : i32, i32
  }
  func.func @transform_2(%arg0: i32) -> (i32, i32) {
    %c0_i32 = arith.constant 0 : i32
    %c0_i32_0 = arith.constant 0 : i32
    %c0_i32_1 = arith.constant 0 : i32
    return %c0_i32, %c0_i32_0 : i32, i32
  }
  func.func @transform_3(%arg0: i32) -> (i32, i32) {
    %c0_i32 = arith.constant 0 : i32
    %c0_i32_0 = arith.constant 0 : i32
    return %arg0, %c0_i32 : i32, i32
  }
}

</mosaic_0001>

<bundles_post_ra>
// kernel: _encoder_forward_arrays.3
= control target key start
LH: loop header
LB: loop body
LE: loop exit
PB: predicated region body
PF: predicated region fallthrough
CT: control target
= control target key end

     0   :  { %s1759_s12 = smov 0   ;;  %s2119_s0 = inlined_call_operand.vmem [shape: bf16[1024,32], index: 0, kind: input, shape index: {}]   ;;  %s2120_s1 = inlined_call_operand.vmem [shape: bf16[32,32], index: 1, kind: input, shape index: {}]   ;;  %s2121_s2 = inlined_call_operand.vmem [shape: f32[1,32], index: 2, kind: input, shape index: {}]   ;;  %s2122_s3 = inlined_call_operand.vmem [shape: bf16[1024,32], index: 3, kind: output, shape index: {}]  }
   0x1 LB: > { %s1377_s13 = sadd.s32 4294967295, %s1737_s12   ;;  %p1381_p0 = scmp.ge.s32.totalorder %s1737_s12, 1  ;;  %s1737_s12 = sphi %s1759_s12, %s13_s12  }
   0x2   : > { %p138_p1 = scmp.lt.s32.totalorder %s1737_s12, 3 }
   0x4   : > { %p139_p2 = pnand %p1381_p0, %p138_p1 }
   0x5   : > { %v1697_v0 = vld [vmem:[%s2120_s1] sm:$0xff] (!%p139_p2)   ;;  %s1382_s16 = sshll.u32 (!%p139_p2), %s1377_s13, 6  ;;  %v1698_v1 = vld [vmem:[%s2120_s1 + $0x8] sm:$0xff] (!%p139_p2)   ;;  %vm422_vm0 = vcmask (!%p139_p2), 261120   ;;  %vm1256_vm1 = vcmask (!%p139_p2), 257024  }
   0x6   : > { %142 = sbr.rel (%p139_p2) target bundleno = 317 (0x13d), region = 32  ;;  %p163_p3 = scmp.lt.s32.totalorder (!%p139_p2), %s1382_s16, 127  ;;  %1617 = vmatprep.subr.bf16.mxu0 (!%p139_p2), %v1697_v0  ;;  %1685 = vmatprep.subr.bf16.mxu1 (!%p139_p2), %v1697_v0  ;;  %v1850_v34 = vld [vmem:[%s2121_s2] ss:$0 sm:$0xff] (!%p139_p2) }
   0x7   : > { %1618 = vmatpush3.bf16.msra.mxu0 (!%p139_p2), %v1697_v0  ;;  %1687 = vmatpush3.bf16.msra.mxu1 (!%p139_p2), %v1697_v0 }
   0x8   : > { %1619 = vmatprep.subr.bf16.mxu0 (!%p139_p2), %v1698_v1  ;;  %1686 = vmatprep.subr.bf16.mxu1 (!%p139_p2), %v1698_v1 }
   0xb   : > { %1620 = vmatpush3.bf16.msra.mxu0 (!%p139_p2), %v1698_v1  ;;  %1688 = vmatpush3.bf16.msra.mxu1 (!%p139_p2), %v1698_v1 }
   0xd   : > { %s2124_s16 = smov (!%p163_p3, %s1382_s16), 127 }
   0xe   : > { %s1383_s19 = sshll.u32 %s2124_s16, 2 }
   0xf   : > { %s1781_s22 = scalar_lea.vmem %s2119_s0, %s1383_s19  ;;  %s1862_s27 = scalar_lea.vmem %s2122_s3, %s1383_s19 }
  0x10   : > { %v1699_v2 = vld [vmem:[%s1781_s22] sm:$0xff]   ;;  %v1701_v4 = vld [vmem:[%s1781_s22 + $0x8] sm:$0xff]   ;;  %v1703_v6 = vld [vmem:[%s1781_s22 + $0x10] sm:$0xff]  }
  0x11   : > { %v1700_v3 = vld [vmem:[%s1781_s22 + $0x80] sm:$0xff]   ;;  %1621 = vmatprep.mubr.msk.bf16.mxu0 %vm422_vm0, %v1699_v2  ;;  %v1702_v5 = vld [vmem:[%s1781_s22 + $0x88] sm:$0xff]   ;;  %v1704_v7 = vld [vmem:[%s1781_s22 + $0x90] sm:$0xff]  }
  0x12   : > { %1653 = vmatprep.mubr.msk.bf16.mxu1 %vm422_vm0, %v1700_v3  ;;  %1622 = vmatmul.mubr.msk.bf16.vlgmr.msra.gmra.mrb[0].mxu0 %vm422_vm0, %v1701_v4  ;;  %v1705_v8 = vld [vmem:[%s1781_s22 + $0x18] sm:$0xff]   ;;  %v1707_v10 = vld [vmem:[%s1781_s22 + $0x20] sm:$0xff]   ;;  %v1709_v12 = vld [vmem:[%s1781_s22 + $0x28] sm:$0xff]  }
  0x13   : > { %1654 = vmatmul.mubr.msk.bf16.vlgmr.msra.gmra.mrb[0].mxu1 %vm422_vm0, %v1702_v5  ;;  %1625 = vmatprep.mubr.msk.bf16.mxu0 %vm422_vm0, %v1703_v6  ;;  %v1706_v9 = vld [vmem:[%s1781_s22 + $0x98] sm:$0xff]   ;;  %v1708_v11 = vld [vmem:[%s1781_s22 + $0xa0] sm:$0xff]   ;;  %v1710_v13 = vld [vmem:[%s1781_s22 + $0xa8] sm:$0xff]  }
  0x14   : > { %1657 = vmatprep.mubr.msk.bf16.mxu1 %vm422_vm0, %v1704_v7  ;;  %v1711_v14 = vld [vmem:[%s1781_s22 + $0x30] sm:$0xff]   ;;  %v1713_v16 = vld [vmem:[%s1781_s22 + $0x38] sm:$0xff]   ;;  %v1715_v18 = vld [vmem:[%s1781_s22 + $0x40] sm:$0xff]  }
  0x15   : > { %v1712_v15 = vld [vmem:[%s1781_s22 + $0xb0] sm:$0xff]   ;;  %v1714_v17 = vld [vmem:[%s1781_s22 + $0xb8] sm:$0xff]   ;;  %v1716_v19 = vld [vmem:[%s1781_s22 + $0xc0] sm:$0xff]  }
  0x16   : > { %v1717_v20 = vld [vmem:[%s1781_s22 + $0x48] sm:$0xff]   ;;  %v1719_v22 = vld [vmem:[%s1781_s22 + $0x50] sm:$0xff]   ;;  %v1721_v24 = vld [vmem:[%s1781_s22 + $0x58] sm:$0xff]  }
  0x17   : > { %v1718_v21 = vld [vmem:[%s1781_s22 + $0xc8] sm:$0xff]   ;;  %v1720_v23 = vld [vmem:[%s1781_s22 + $0xd0] sm:$0xff]   ;;  %v1722_v25 = vld [vmem:[%s1781_s22 + $0xd8] sm:$0xff]  }
  0x18   : > { %v1723_v26 = vld [vmem:[%s1781_s22 + $0x60] sm:$0xff]   ;;  %v1725_v28 = vld [vmem:[%s1781_s22 + $0x68] sm:$0xff]   ;;  %v1727_v30 = vld [vmem:[%s1781_s22 + $0x70] sm:$0xff]  }
  0x19   : > { %v1724_v27 = vld [vmem:[%s1781_s22 + $0xe0] sm:$0xff]   ;;  %v1726_v29 = vld [vmem:[%s1781_s22 + $0xe8] sm:$0xff]   ;;  %v1728_v31 = vld [vmem:[%s1781_s22 + $0xf0] sm:$0xff]  }
  0x1a   : > { %1626 = vmatmul.mubr.msk.bf16.gmra.mrb[4].mxu0 %vm422_vm0, %v1705_v8  ;;  %v1729_v32 = vld [vmem:[%s1781_s22 + $0x78] sm:$0xff]  }
  0x1b   : > { %1658 = vmatmul.mubr.msk.bf16.gmra.mrb[4].mxu1 %vm422_vm0, %v1706_v9  ;;  %1629 = vmatprep.mubr.msk.bf16.mxu0 %vm422_vm0, %v1707_v10  ;;  %v1730_v33 = vld [vmem:[%s1781_s22 + $0xf8] sm:$0xff]  }
  0x1c   : > { %1661 = vmatprep.mubr.msk.bf16.mxu1 %vm422_vm0, %v1708_v11 }
  0x22   : > { %1630 = vmatmul.mubr.msk.bf16.gmra.mrb[8].mxu0 %vm422_vm0, %v1709_v12 }
  0x23   : > { %1662 = vmatmul.mubr.msk.bf16.gmra.mrb[8].mxu1 %vm422_vm0, %v1710_v13  ;;  %1633 = vmatprep.mubr.msk.bf16.mxu0 %vm422_vm0, %v1711_v14 }
  0x24   : > { %1665 = vmatprep.mubr.msk.bf16.mxu1 %vm422_vm0, %v1712_v15 }
  0x2a   : > { %1634 = vmatmul.mubr.msk.bf16.gmra.mrb[12].mxu0 %vm422_vm0, %v1713_v16 }
  0x2b   : > { %1666 = vmatmul.mubr.msk.bf16.gmra.mrb[12].mxu1 %vm422_vm0, %v1714_v17  ;;  %1637 = vmatprep.mubr.msk.bf16.mxu0 %vm422_vm0, %v1715_v18 }
  0x2c   : > { %1669 = vmatprep.mubr.msk.bf16.mxu1 %vm422_vm0, %v1716_v19 }
  0x32   : > { %1638 = vmatmul.mubr.msk.bf16.gmra.mrb[16].mxu0 %vm422_vm0, %v1717_v20 }
  0x33   : > { %1670 = vmatmul.mubr.msk.bf16.gmra.mrb[16].mxu1 %vm422_vm0, %v1718_v21  ;;  %1641 = vmatprep.mubr.msk.bf16.mxu0 %vm422_vm0, %v1719_v22 }
  0x34   : > { %1673 = vmatprep.mubr.msk.bf16.mxu1 %vm422_vm0, %v1720_v23 }
  0x3a   : > { %1642 = vmatmul.mubr.msk.bf16.gmra.mrb[20].mxu0 %vm422_vm0, %v1721_v24 }
  0x3b   : > { %1674 = vmatmul.mubr.msk.bf16.gmra.mrb[20].mxu1 %vm422_vm0, %v1722_v25  ;;  %1645 = vmatprep.mubr.msk.bf16.mxu0 %vm422_vm0, %v1723_v26 }
  0x3c   : > { %1677 = vmatprep.mubr.msk.bf16.mxu1 %vm422_vm0, %v1724_v27 }
  0x42   : > { %1646 = vmatmul.mubr.msk.bf16.gmra.mrb[24].mxu0 %vm422_vm0, %v1725_v28 }
  0x43   : > { %1678 = vmatmul.mubr.msk.bf16.gmra.mrb[24].mxu1 %vm422_vm0, %v1726_v29  ;;  %1649 = vmatprep.mubr.msk.bf16.mxu0 %vm422_vm0, %v1727_v30 }
  0x44   : > { %1681 = vmatprep.mubr.msk.bf16.mxu1 %vm422_vm0, %v1728_v31 }
  0x4a   : > { %1650 = vmatmul.mubr.msk.bf16.gmra.mrb[28].mxu0 %vm422_vm0, %v1729_v32 }
  0x4b   : > { %1682 = vmatmul.mubr.msk.bf16.gmra.mrb[28].mxu1 %vm422_vm0, %v1730_v33 }
  0xe5   : > { %v1623_v35 = vpop.f32.mrb[0].mxu0 }
  0xe6   : > { %v562_v36 = vadd.f32 %v1623_v35, %v1850_v34  ;;  %v1655_v37 = vpop.f32.mrb[0].mxu1  ;;  %v553_v38 = vpop.f32.mrb[1].mxu0 }
  0xe7   : > { %v690_v39 = vadd.f32 %v1655_v37, %v1850_v34  ;;  %v554_v40 = vadd.f32 %v1850_v34, %v553_v38  ;;  %v681_v41 = vpop.f32.mrb[1].mxu1  ;;  %v1624_v42 = vpop.f32.mrb[2].mxu0 }
  0xe8   : > { %vm810_vm2 = vcmp.gt.f32.partialorder %v562_v36, 0.0  ;;  %v874_v43 = vmul.f32 0.1, %v562_v36  ;;  %v682_v44 = vadd.f32 %v1850_v34, %v681_v41  ;;  %v565_v45 = vadd.f32 %v1624_v42, %v1850_v34  ;;  %v1656_v46 = vpop.f32.mrb[2].mxu1  ;;  %v556_v47 = vpop.f32.mrb[3].mxu0 }
  0xe9   : > { %vm842_vm3 = vcmp.gt.f32.partialorder %v690_v39, 0.0  ;;  %v906_v48 = vmul.f32 0.1, %v690_v39  ;;  %vm808_vm4 = vcmp.gt.f32.partialorder %v554_v40, 0.0  ;;  %v872_v49 = vmul.f32 0.1, %v554_v40 }
  0xea   : > { %v938_v50 = vsel %vm810_vm2, %v562_v36, %v874_v43  ;;  %vm840_vm5 = vcmp.gt.f32.partialorder %v682_v44, 0.0  ;;  %v904_v51 = vmul.f32 0.1, %v682_v44  ;;  %vm811_vm6 = vcmp.gt.f32.partialorder %v565_v45, 0.0  ;;  %v684_v52 = vpop.f32.mrb[3].mxu1 }
  0xeb   : > { %v1521_v53 = vpack.c.bf16 %v938_v50, %v938_v50  ;;  %v970_v54 = vsel %vm842_vm3, %v690_v39, %v906_v48  ;;  %v936_v55 = vsel %vm808_vm4, %v554_v40, %v872_v49  ;;  %v875_v56 = vmul.f32 0.1, %v565_v45 }
  0xec   : > { %v1553_v57 = vpack.c.bf16 %v970_v54, %v970_v54  ;;  %v1519_v58 = vpack.c.bf16 %v936_v55, %v936_v55  ;;  %v968_v59 = vsel %vm840_vm5, %v682_v44, %v904_v51  ;;  %v693_v60 = vadd.f32 %v1656_v46, %v1850_v34 }
  0xed   : > { %1259 = vst.msk [vmem:[%s1862_s27 + $0x8] sm:$0xf] %vm1256_vm1, %v1521_v53  ;;  %v1551_v61 = vpack.c.bf16 %v968_v59, %v968_v59  ;;  %v939_v62 = vsel %vm811_vm6, %v565_v45, %v875_v56  ;;  %v557_v63 = vadd.f32 %v1850_v34, %v556_v47  ;;  %v685_v0 = vadd.f32 %v1850_v34, %v684_v52  ;;  %v1627_v1 = vpop.f32.mrb[4].mxu0 }
  0xee   : > { %1291 = vst.msk [vmem:[%s1862_s27 + $0x88] sm:$0xf] %vm1256_vm1, %v1553_v57  ;;  %1257 = vst.msk [vmem:[%s1862_s27] sm:$0xf] %vm1256_vm1, %v1519_v58  ;;  %v1522_v2 = vpack.c.bf16 %v939_v62, %v939_v62  ;;  %vm843_vm7 = vcmp.gt.f32.partialorder %v693_v60, 0.0  ;;  %v578_v4 = vadd.f32 %v1627_v1, %v1850_v34  ;;  %v1659_v5 = vpop.f32.mrb[4].mxu1 }
  0xef   : > { %v907_v3 = vmul.f32 0.1, %v693_v60  ;;  %v569_v6 = vpop.f32.mrb[5].mxu0  ;;  %1289 = vst.msk [vmem:[%s1862_s27 + $0x80] sm:$0xf] %vm1256_vm1, %v1551_v61  ;;  %vm809_vm8 = vcmp.gt.f32.partialorder %v557_v63, 0.0  ;;  %v706_v11 = vadd.f32 %v1659_v5, %v1850_v34 }
  0xf0   : > { %v873_v7 = vmul.f32 0.1, %v557_v63  ;;  %vm841_vm9 = vcmp.gt.f32.partialorder %v685_v0, 0.0  ;;  %v905_v8 = vmul.f32 0.1, %v685_v0  ;;  %vm814_vm10 = vcmp.gt.f32.partialorder %v578_v4, 0.0 }
  0xf1   : > { %1260 = vst.msk [vmem:[%s1862_s27 + $0xc] sm:$0xf] %vm1256_vm1, %v1522_v2  ;;  %v971_v9 = vsel %vm843_vm7, %v693_v60, %v907_v3  ;;  %v878_v10 = vmul.f32 0.1, %v578_v4  ;;  %v697_v12 = vpop.f32.mrb[5].mxu1  ;;  %v1628_v13 = vpop.f32.mrb[6].mxu0  ;;  %v570_v17 = vadd.f32 %v1850_v34, %v569_v6 }
  0xf2   : > { %v1554_v14 = vpack.c.bf16 %v971_v9, %v971_v9  ;;  %v937_v15 = vsel %vm809_vm8, %v557_v63, %v873_v7  ;;  %v969_v16 = vsel %vm841_vm9, %v685_v0, %v905_v8  ;;  %v1660_v18 = vpop.f32.mrb[6].mxu1  ;;  %v572_v19 = vpop.f32.mrb[7].mxu0  ;;  %vm846_vm11 = vcmp.gt.f32.partialorder %v706_v11, 0.0 }
  0xf3   : > { %v1520_v20 = vpack.c.bf16 %v937_v15, %v937_v15  ;;  %v1552_v21 = vpack.c.bf16 %v969_v16, %v969_v16  ;;  %v942_v22 = vsel %vm814_vm10, %v578_v4, %v878_v10  ;;  %v700_v23 = vpop.f32.mrb[7].mxu1  ;;  %v910_v25 = vmul.f32 0.1, %v706_v11 }
  0xf4   : > { %1292 = vst.msk [vmem:[%s1862_s27 + $0x8c] sm:$0xf] %vm1256_vm1, %v1554_v14  ;;  %v1525_v24 = vpack.c.bf16 %v942_v22, %v942_v22  ;;  %vm812_vm12 = vcmp.gt.f32.partialorder %v570_v17, 0.0  ;;  %v876_v26 = vmul.f32 0.1, %v570_v17  ;;  %v698_v27 = vadd.f32 %v1850_v34, %v697_v12 }
  0xf5   : > { %1258 = vst.msk [vmem:[%s1862_s27 + $0x4] sm:$0xf] %vm1256_vm1, %v1520_v20  ;;  %1290 = vst.msk [vmem:[%s1862_s27 + $0x84] sm:$0xf] %vm1256_vm1, %v1552_v21  ;;  %v581_v28 = vadd.f32 %v1628_v13, %v1850_v34  ;;  %v709_v29 = vadd.f32 %v1660_v18, %v1850_v34  ;;  %v573_v30 = vadd.f32 %v1850_v34, %v572_v19  ;;  %v1631_v35 = vpop.f32.mrb[8].mxu0 }
  0xf6   : > { %1263 = vst.msk [vmem:[%s1862_s27 + $0x18] sm:$0xf] %vm1256_vm1, %v1525_v24  ;;  %v974_v31 = vsel %vm846_vm11, %v706_v11, %v910_v25  ;;  %v940_v32 = vsel %vm812_vm12, %v570_v17, %v876_v26  ;;  %v701_v33 = vadd.f32 %v1850_v34, %v700_v23  ;;  %vm844_vm13 = vcmp.gt.f32.partialorder %v698_v27, 0.0  ;;  %v1663_v39 = vpop.f32.mrb[8].mxu1  ;;  %v585_v40 = vpop.f32.mrb[9].mxu0 }
  0xf7   : > { %v1557_v36 = vpack.c.bf16 %v974_v31, %v974_v31  ;;  %v1523_v37 = vpack.c.bf16 %v940_v32, %v940_v32  ;;  %v908_v38 = vmul.f32 0.1, %v698_v27  ;;  %vm815_vm14 = vcmp.gt.f32.partialorder %v581_v28, 0.0  ;;  %v713_v45 = vpop.f32.mrb[9].mxu1  ;;  %v1632_v46 = vpop.f32.mrb[10].mxu0 }
  0xf8   : > { %v879_v41 = vmul.f32 0.1, %v581_v28  ;;  %vm847_vm15 = vcmp.gt.f32.partialorder %v709_v29, 0.0  ;;  %v911_v42 = vmul.f32 0.1, %v709_v29  ;;  %vm813_vm0 = vcmp.gt.f32.partialorder %v573_v30, 0.0 }
  0xf9   : > { %1295 = vst.msk [vmem:[%s1862_s27 + $0x98] sm:$0xf] %vm1256_vm1, %v1557_v36  ;;  %1261 = vst.msk [vmem:[%s1862_s27 + $0x10] sm:$0xf] %vm1256_vm1, %v1523_v37  ;;  %v972_v43 = vsel %vm844_vm13, %v698_v27, %v908_v38  ;;  %v877_v44 = vmul.f32 0.1, %v573_v30  ;;  %v594_v56 = vadd.f32 %v1631_v35, %v1850_v34  ;;  %v722_v60 = vadd.f32 %v1663_v39, %v1850_v34 }
  0xfa   : > { %vm845_vm2 = vcmp.gt.f32.partialorder %v701_v33, 0.0  ;;  %v1555_v47 = vpack.c.bf16 %v972_v43, %v972_v43  ;;  %v943_v48 = vsel %vm815_vm14, %v581_v28, %v879_v41  ;;  %v975_v49 = vsel %vm847_vm15, %v709_v29, %v911_v42  ;;  %v1664_v51 = vpop.f32.mrb[10].mxu1  ;;  %v588_v52 = vpop.f32.mrb[11].mxu0 }
  0xfb   : > { %v909_v50 = vmul.f32 0.1, %v701_v33  ;;  %v1526_v53 = vpack.c.bf16 %v943_v48, %v943_v48  ;;  %v1558_v54 = vpack.c.bf16 %v975_v49, %v975_v49  ;;  %v941_v55 = vsel %vm813_vm0, %v573_v30, %v877_v44  ;;  %v716_v57 = vpop.f32.mrb[11].mxu1 }
  0xfc   : > { %1293 = vst.msk [vmem:[%s1862_s27 + $0x90] sm:$0xf] %vm1256_vm1, %v1555_v47  ;;  %v1524_v58 = vpack.c.bf16 %v941_v55, %v941_v55  ;;  %v586_v61 = vadd.f32 %v1850_v34, %v585_v40  ;;  %vm818_vm3 = vcmp.gt.f32.partialorder %v594_v56, 0.0  ;;  %v882_v63 = vmul.f32 0.1, %v594_v56 }
  0xfd   : > { %v973_v59 = vsel %vm845_vm2, %v701_v33, %v909_v50  ;;  %1264 = vst.msk [vmem:[%s1862_s27 + $0x1c] sm:$0xf] %vm1256_vm1, %v1526_v53  ;;  %1296 = vst.msk [vmem:[%s1862_s27 + $0x9c] sm:$0xf] %vm1256_vm1, %v1558_v54  ;;  %v714_v0 = vadd.f32 %v1850_v34, %v713_v45  ;;  %vm850_vm4 = vcmp.gt.f32.partialorder %v722_v60, 0.0  ;;  %v597_v5 = vadd.f32 %v1632_v46, %v1850_v34  ;;  %v1635_v6 = vpop.f32.mrb[12].mxu0 }
  0xfe   : > { %v1556_v62 = vpack.c.bf16 %v973_v59, %v973_v59  ;;  %1262 = vst.msk [vmem:[%s1862_s27 + $0x14] sm:$0xf] %vm1256_vm1, %v1524_v58  ;;  %v914_v1 = vmul.f32 0.1, %v722_v60  ;;  %vm816_vm5 = vcmp.gt.f32.partialorder %v586_v61, 0.0  ;;  %v946_v3 = vsel %vm818_vm3, %v594_v56, %v882_v63  ;;  %v1667_v7 = vpop.f32.mrb[12].mxu1 }
  0xff   : > { %v880_v2 = vmul.f32 0.1, %v586_v61  ;;  %vm848_vm6 = vcmp.gt.f32.partialorder %v714_v0, 0.0  ;;  %v912_v4 = vmul.f32 0.1, %v714_v0  ;;  %v1529_v8 = vpack.c.bf16 %v946_v3, %v946_v3  ;;  %v601_v12 = vpop.f32.mrb[13].mxu0 }
 0x100   : > { %1294 = vst.msk [vmem:[%s1862_s27 + $0x94] sm:$0xf] %vm1256_vm1, %v1556_v62  ;;  %v978_v9 = vsel %vm850_vm4, %v722_v60, %v914_v1  ;;  %v725_v11 = vadd.f32 %v1664_v51, %v1850_v34  ;;  %v729_v13 = vpop.f32.mrb[13].mxu1  ;;  %vm819_vm7 = vcmp.gt.f32.partialorder %v597_v5, 0.0  ;;  %v1636_v17 = vpop.f32.mrb[14].mxu0  ;;  %v589_v23 = vadd.f32 %v1850_v34, %v588_v52 }
 0x101   : > { %v944_v10 = vsel %vm816_vm5, %v586_v61, %v880_v2  ;;  %v1561_v14 = vpack.c.bf16 %v978_v9, %v978_v9  ;;  %v976_v16 = vsel %vm848_vm6, %v714_v0, %v912_v4  ;;  %v1668_v18 = vpop.f32.mrb[14].mxu1  ;;  %1267 = vst.msk [vmem:[%s1862_s27 + $0x28] sm:$0xf] %vm1256_vm1, %v1529_v8  ;;  %v883_v20 = vmul.f32 0.1, %v597_v5  ;;  %v604_v22 = vpop.f32.mrb[15].mxu0 }
 0x102   : > { %v1527_v15 = vpack.c.bf16 %v944_v10, %v944_v10  ;;  %v1559_v19 = vpack.c.bf16 %v976_v16, %v976_v16  ;;  %vm851_vm8 = vcmp.gt.f32.partialorder %v725_v11, 0.0  ;;  %v915_v21 = vmul.f32 0.1, %v725_v11  ;;  %v732_v27 = vpop.f32.mrb[15].mxu1 }
 0x103   : > { %1299 = vst.msk [vmem:[%s1862_s27 + $0xa8] sm:$0xf] %vm1256_vm1, %v1561_v14  ;;  %v717_v24 = vadd.f32 %v1850_v34, %v716_v57  ;;  %v610_v25 = vadd.f32 %v1635_v6, %v1850_v34  ;;  %v738_v26 = vadd.f32 %v1667_v7, %v1850_v34  ;;  %v947_v28 = vsel %vm819_vm7, %v597_v5, %v883_v20 }
 0x104   : > { %1265 = vst.msk [vmem:[%s1862_s27 + $0x20] sm:$0xf] %vm1256_vm1, %v1527_v15  ;;  %1297 = vst.msk [vmem:[%s1862_s27 + $0xa0] sm:$0xf] %vm1256_vm1, %v1559_v19  ;;  %v979_v29 = vsel %vm851_vm8, %v725_v11, %v915_v21  ;;  %v602_v30 = vadd.f32 %v1850_v34, %v601_v12  ;;  %v730_v31 = vadd.f32 %v1850_v34, %v729_v13  ;;  %vm817_vm9 = vcmp.gt.f32.partialorder %v589_v23, 0.0 }
 0x105   : > { %v1530_v32 = vpack.c.bf16 %v947_v28, %v947_v28  ;;  %v1562_v33 = vpack.c.bf16 %v979_v29, %v979_v29  ;;  %v881_v35 = vmul.f32 0.1, %v589_v23  ;;  %vm849_vm10 = vcmp.gt.f32.partialorder %v717_v24, 0.0  ;;  %v1639_v40 = vpop.f32.mrb[16].mxu0 }
 0x106   : > { %v913_v36 = vmul.f32 0.1, %v717_v24  ;;  %vm822_vm11 = vcmp.gt.f32.partialorder %v610_v25, 0.0  ;;  %v886_v37 = vmul.f32 0.1, %v610_v25  ;;  %vm854_vm12 = vcmp.gt.f32.partialorder %v738_v26, 0.0 }
 0x107   : > { %1268 = vst.msk [vmem:[%s1862_s27 + $0x2c] sm:$0xf] %vm1256_vm1, %v1530_v32  ;;  %1300 = vst.msk [vmem:[%s1862_s27 + $0xac] sm:$0xf] %vm1256_vm1, %v1562_v33  ;;  %v945_v38 = vsel %vm817_vm9, %v589_v23, %v881_v35  ;;  %v918_v39 = vmul.f32 0.1, %v738_v26  ;;  %v613_v56 = vadd.f32 %v1636_v17, %v1850_v34  ;;  %v741_v60 = vadd.f32 %v1668_v18, %v1850_v34 }
 0x108   : > { %vm820_vm13 = vcmp.gt.f32.partialorder %v602_v30, 0.0  ;;  %v1671_v41 = vpop.f32.mrb[16].mxu1  ;;  %v1528_v42 = vpack.c.bf16 %v945_v38, %v945_v38  ;;  %v977_v43 = vsel %vm849_vm10, %v717_v24, %v913_v36  ;;  %v950_v44 = vsel %vm822_vm11, %v610_v25, %v886_v37  ;;  %v617_v46 = vpop.f32.mrb[17].mxu0 }
 0x109   : > { %v884_v45 = vmul.f32 0.1, %v602_v30  ;;  %v745_v47 = vpop.f32.mrb[17].mxu1  ;;  %v1560_v48 = vpack.c.bf16 %v977_v43, %v977_v43  ;;  %v1533_v49 = vpack.c.bf16 %v950_v44, %v950_v44  ;;  %v982_v50 = vsel %vm854_vm12, %v738_v26, %v918_v39  ;;  %v1640_v51 = vpop.f32.mrb[18].mxu0 }
 0x10a   : > { %vm852_vm14 = vcmp.gt.f32.partialorder %v730_v31, 0.0  ;;  %v1672_v52 = vpop.f32.mrb[18].mxu1  ;;  %1266 = vst.msk [vmem:[%s1862_s27 + $0x24] sm:$0xf] %vm1256_vm1, %v1528_v42  ;;  %v1565_v53 = vpack.c.bf16 %v982_v50, %v982_v50  ;;  %v916_v55 = vmul.f32 0.1, %v730_v31  ;;  %v605_v61 = vadd.f32 %v1850_v34, %v604_v22 }
 0x10b   : > { %v948_v54 = vsel %vm820_vm13, %v602_v30, %v884_v45  ;;  %v620_v57 = vpop.f32.mrb[19].mxu0  ;;  %v1937_v58 = vpop.f32.mrb[19].mxu1  ;;  %1298 = vst.msk [vmem:[%s1862_s27 + $0xa4] sm:$0xf] %vm1256_vm1, %v1560_v48  ;;  %1271 = vst.msk [vmem:[%s1862_s27 + $0x38] sm:$0xf] %vm1256_vm1, %v1533_v49  ;;  %v733_v62 = vadd.f32 %v1850_v34, %v732_v27  ;;  %v626_v1 = vadd.f32 %v1639_v40, %v1850_v34 }
 0x10c   : > { %v1531_v59 = vpack.c.bf16 %v948_v54, %v948_v54  ;;  %1303 = vst.msk [vmem:[%s1862_s27 + $0xb8] sm:$0xf] %vm1256_vm1, %v1565_v53  ;;  %v980_v63 = vsel %vm852_vm14, %v730_v31, %v916_v55  ;;  %vm823_vm15 = vcmp.gt.f32.partialorder %v613_v56, 0.0  ;;  %v887_v0 = vmul.f32 0.1, %v613_v56 }
 0x10d   : > { %v1563_v2 = vpack.c.bf16 %v980_v63, %v980_v63  ;;  %vm855_vm0 = vcmp.gt.f32.partialorder %v741_v60, 0.0  ;;  %v919_v3 = vmul.f32 0.1, %v741_v60  ;;  %vm821_vm2 = vcmp.gt.f32.partialorder %v605_v61, 0.0  ;;  %v1643_v7 = vpop.f32.mrb[20].mxu0 }
 0x10e   : > { %1269 = vst.msk [vmem:[%s1862_s27 + $0x30] sm:$0xf] %vm1256_vm1, %v1531_v59  ;;  %v951_v4 = vsel %vm823_vm15, %v613_v56, %v887_v0  ;;  %v885_v5 = vmul.f32 0.1, %v605_v61  ;;  %vm853_vm3 = vcmp.gt.f32.partialorder %v733_v62, 0.0  ;;  %vm826_vm4 = vcmp.gt.f32.partialorder %v626_v1, 0.0 }
 0x10f   : > { %v917_v6 = vmul.f32 0.1, %v733_v62  ;;  %1301 = vst.msk [vmem:[%s1862_s27 + $0xb0] sm:$0xf] %vm1256_vm1, %v1563_v2  ;;  %v1534_v8 = vpack.c.bf16 %v951_v4, %v951_v4  ;;  %v983_v9 = vsel %vm855_vm0, %v741_v60, %v919_v3  ;;  %v890_v10 = vmul.f32 0.1, %v626_v1 }
 0x110   : > { %v1675_v11 = vpop.f32.mrb[20].mxu1  ;;  %v633_v12 = vpop.f32.mrb[21].mxu0  ;;  %v1566_v13 = vpack.c.bf16 %v983_v9, %v983_v9  ;;  %v949_v14 = vsel %vm821_vm2, %v605_v61, %v885_v5  ;;  %v754_v16 = vadd.f32 %v1671_v41, %v1850_v34  ;;  %v618_v22 = vadd.f32 %v1850_v34, %v617_v46 }
 0x111   : > { %v981_v15 = vsel %vm853_vm3, %v733_v62, %v917_v6  ;;  %v1955_v17 = vpop.f32.mrb[21].mxu1  ;;  %v1957_v18 = vpop.f32.mrb[22].mxu0  ;;  %1272 = vst.msk [vmem:[%s1862_s27 + $0x3c] sm:$0xf] %vm1256_vm1, %v1534_v8  ;;  %v1532_v19 = vpack.c.bf16 %v949_v14, %v949_v14  ;;  %v954_v21 = vsel %vm826_vm4, %v626_v1, %v890_v10  ;;  %v746_v27 = vadd.f32 %v1850_v34, %v745_v47 }
 0x112   : > { %v1564_v20 = vpack.c.bf16 %v981_v15, %v981_v15  ;;  %v1962_v23 = vpop.f32.mrb[22].mxu1  ;;  %v1964_v24 = vpop.f32.mrb[23].mxu0  ;;  %1304 = vst.msk [vmem:[%s1862_s27 + $0xbc] sm:$0xf] %vm1256_vm1, %v1566_v13  ;;  %v1537_v25 = vpack.c.bf16 %v954_v21, %v954_v21  ;;  %vm858_vm5 = vcmp.gt.f32.partialorder %v754_v16, 0.0  ;;  %vm824_vm6 = vcmp.gt.f32.partialorder %v618_v22, 0.0 }
 0x113   : > { %v922_v26 = vmul.f32 0.1, %v754_v16  ;;  %v1969_v28 = vpop.f32.mrb[23].mxu1  ;;  %1270 = vst.msk [vmem:[%s1862_s27 + $0x34] sm:$0xf] %vm1256_vm1, %v1532_v19  ;;  %v629_v30 = vadd.f32 %v1640_v51, %v1850_v34  ;;  %v757_v31 = vadd.f32 %v1672_v52, %v1850_v34  ;;  %vm856_vm7 = vcmp.gt.f32.partialorder %v746_v27, 0.0 }
 0x114   : > { %1302 = vst.msk [vmem:[%s1862_s27 + $0xb4] sm:$0xf] %vm1256_vm1, %v1564_v20  ;;  %v888_v29 = vmul.f32 0.1, %v618_v22  ;;  %1275 = vst.msk [vmem:[%s1862_s27 + $0x48] sm:$0xf] %vm1256_vm1, %v1537_v25  ;;  %v621_v35 = vadd.f32 %v1850_v34, %v620_v57  ;;  %v749_v50 = vadd.f32 %v1850_v34, %v1937_v58  ;;  %v642_v51 = vadd.f32 %v1643_v7, %v1850_v34 }
 0x115   : > { %v986_v32 = vsel %vm858_vm5, %v754_v16, %v922_v26  ;;  %v920_v33 = vmul.f32 0.1, %v746_v27  ;;  %vm827_vm8 = vcmp.gt.f32.partialorder %v629_v30, 0.0  ;;  %v891_v38 = vmul.f32 0.1, %v629_v30  ;;  %v1980_v42 = vpop.f32.mrb[24].mxu0 }
 0x116   : > { %v1569_v36 = vpack.c.bf16 %v986_v32, %v986_v32  ;;  %v952_v37 = vsel %vm824_vm6, %v618_v22, %v888_v29  ;;  %vm859_vm9 = vcmp.gt.f32.partialorder %v757_v31, 0.0  ;;  %v923_v41 = vmul.f32 0.1, %v757_v31  ;;  %v1679_v46 = vpop.f32.mrb[24].mxu1  ;;  %v1984_v47 = vpop.f32.mrb[25].mxu0 }
 0x117   : > { %v1535_v39 = vpack.c.bf16 %v952_v37, %v952_v37  ;;  %v984_v40 = vsel %vm856_vm7, %v746_v27, %v920_v33  ;;  %v955_v44 = vsel %vm827_vm8, %v629_v30, %v891_v38  ;;  %vm825_vm10 = vcmp.gt.f32.partialorder %v621_v35, 0.0  ;;  %v1991_v52 = vpop.f32.mrb[25].mxu1  ;;  %v1993_v53 = vpop.f32.mrb[26].mxu0 }
 0x118   : > { %1307 = vst.msk [vmem:[%s1862_s27 + $0xc8] sm:$0xf] %vm1256_vm1, %v1569_v36  ;;  %v1567_v43 = vpack.c.bf16 %v984_v40, %v984_v40  ;;  %v889_v45 = vmul.f32 0.1, %v621_v35  ;;  %v1538_v48 = vpack.c.bf16 %v955_v44, %v955_v44  ;;  %v987_v49 = vsel %vm859_vm9, %v757_v31, %v923_v41  ;;  %v1999_v59 = vpop.f32.mrb[26].mxu1  ;;  %v2001_v60 = vpop.f32.mrb[27].mxu0 }
 0x119   : > { %1273 = vst.msk [vmem:[%s1862_s27 + $0x40] sm:$0xf] %vm1256_vm1, %v1535_v39  ;;  %v1570_v54 = vpack.c.bf16 %v987_v49, %v987_v49  ;;  %v770_v56 = vadd.f32 %v1675_v11, %v1850_v34  ;;  %v634_v57 = vadd.f32 %v1850_v34, %v633_v12  ;;  %vm857_vm11 = vcmp.gt.f32.partialorder %v749_v50, 0.0  ;;  %v2005_v62 = vpop.f32.mrb[27].mxu1 }
 0x11a   : > { %1305 = vst.msk [vmem:[%s1862_s27 + $0xc0] sm:$0xf] %vm1256_vm1, %v1567_v43  ;;  %v953_v55 = vsel %vm825_vm10, %v621_v35, %v889_v45  ;;  %1276 = vst.msk [vmem:[%s1862_s27 + $0x4c] sm:$0xf] %vm1256_vm1, %v1538_v48  ;;  %v921_v61 = vmul.f32 0.1, %v749_v50  ;;  %v762_v3 = vadd.f32 %v1850_v34, %v1955_v17  ;;  %v645_v4 = vadd.f32 %v1957_v18, %v1850_v34 }
 0x11b   : > { %v1536_v58 = vpack.c.bf16 %v953_v55, %v953_v55  ;;  %vm830_vm12 = vcmp.gt.f32.partialorder %v642_v51, 0.0  ;;  %1308 = vst.msk [vmem:[%s1862_s27 + $0xcc] sm:$0xf] %vm1256_vm1, %v1570_v54  ;;  %v894_v63 = vmul.f32 0.1, %v642_v51  ;;  %vm862_vm13 = vcmp.gt.f32.partialorder %v770_v56, 0.0 }
 0x11c   : > { %v926_v0 = vmul.f32 0.1, %v770_v56  ;;  %vm828_vm14 = vcmp.gt.f32.partialorder %v634_v57, 0.0  ;;  %v985_v1 = vsel %vm857_vm11, %v749_v50, %v921_v61  ;;  %v892_v2 = vmul.f32 0.1, %v634_v57 }
 0x11d   : > { %1274 = vst.msk [vmem:[%s1862_s27 + $0x44] sm:$0xf] %vm1256_vm1, %v1536_v58  ;;  %v1568_v5 = vpack.c.bf16 %v985_v1, %v985_v1  ;;  %v958_v6 = vsel %vm830_vm12, %v642_v51, %v894_v63  ;;  %v773_v8 = vadd.f32 %v1962_v23, %v1850_v34  ;;  %vm860_vm15 = vcmp.gt.f32.partialorder %v762_v3, 0.0  ;;  %v1651_v12 = vpop.f32.mrb[28].mxu0 }
 0x11e   : > { %v990_v7 = vsel %vm862_vm13, %v770_v56, %v926_v0  ;;  %v1541_v9 = vpack.c.bf16 %v958_v6, %v958_v6  ;;  %v956_v11 = vsel %vm828_vm14, %v634_v57, %v892_v2  ;;  %v924_v14 = vmul.f32 0.1, %v762_v3  ;;  %v2019_v16 = vpop.f32.mrb[28].mxu1  ;;  %v2029_v20 = vpop.f32.mrb[29].mxu0 }
 0x11f   : > { %v1573_v10 = vpack.c.bf16 %v990_v7, %v990_v7  ;;  %1306 = vst.msk [vmem:[%s1862_s27 + $0xc4] sm:$0xf] %vm1256_vm1, %v1568_v5  ;;  %v1539_v13 = vpack.c.bf16 %v956_v11, %v956_v11  ;;  %vm831_vm0 = vcmp.gt.f32.partialorder %v645_v4, 0.0  ;;  %v895_v15 = vmul.f32 0.1, %v645_v4  ;;  %v2031_v21 = vpop.f32.mrb[29].mxu1 }
 0x120   : > { %1279 = vst.msk [vmem:[%s1862_s27 + $0x58] sm:$0xf] %vm1256_vm1, %v1541_v9  ;;  %vm863_vm2 = vcmp.gt.f32.partialorder %v773_v8, 0.0  ;;  %v927_v17 = vmul.f32 0.1, %v773_v8  ;;  %v637_v18 = vadd.f32 %v1850_v34, %v1964_v24  ;;  %v765_v19 = vadd.f32 %v1850_v34, %v1969_v28  ;;  %v2039_v24 = vpop.f32.mrb[30].mxu0 }
 0x121   : > { %1311 = vst.msk [vmem:[%s1862_s27 + $0xd8] sm:$0xf] %vm1256_vm1, %v1573_v10  ;;  %1277 = vst.msk [vmem:[%s1862_s27 + $0x50] sm:$0xf] %vm1256_vm1, %v1539_v13  ;;  %v988_v22 = vsel %vm860_vm15, %v762_v3, %v924_v14  ;;  %v959_v23 = vsel %vm831_vm0, %v645_v4, %v895_v15  ;;  %v658_v25 = vadd.f32 %v1980_v42, %v1850_v34  ;;  %v2041_v27 = vpop.f32.mrb[30].mxu1  ;;  %v2043_v31 = vpop.f32.mrb[31].mxu0 }
 0x122   : > { %v786_v26 = vadd.f32 %v1679_v46, %v1850_v34  ;;  %v1571_v28 = vpack.c.bf16 %v988_v22, %v988_v22  ;;  %v1542_v29 = vpack.c.bf16 %v959_v23, %v959_v23  ;;  %v991_v30 = vsel %vm863_vm2, %v773_v8, %v927_v17  ;;  %v2045_v32 = vpop.f32.mrb[31].mxu1 }
 0x123   : > { %vm829_vm3 = vcmp.gt.f32.partialorder %v637_v18, 0.0  ;;  %v1574_v33 = vpack.c.bf16 %v991_v30, %v991_v30  ;;  %v893_v35 = vmul.f32 0.1, %v637_v18  ;;  %vm861_vm4 = vcmp.gt.f32.partialorder %v765_v19, 0.0 }
 0x124   : > { %v925_v36 = vmul.f32 0.1, %v765_v19  ;;  %1309 = vst.msk [vmem:[%s1862_s27 + $0xd0] sm:$0xf] %vm1256_vm1, %v1571_v28  ;;  %1280 = vst.msk [vmem:[%s1862_s27 + $0x5c] sm:$0xf] %vm1256_vm1, %v1542_v29  ;;  %v650_v41 = vadd.f32 %v1850_v34, %v1984_v47  ;;  %v778_v42 = vadd.f32 %v1850_v34, %v1991_v52  ;;  %v661_v47 = vadd.f32 %v1993_v53, %v1850_v34 }
 0x125   : > { %vm834_vm5 = vcmp.gt.f32.partialorder %v658_v25, 0.0  ;;  %v898_v37 = vmul.f32 0.1, %v658_v25  ;;  %vm866_vm6 = vcmp.gt.f32.partialorder %v786_v26, 0.0  ;;  %v930_v38 = vmul.f32 0.1, %v786_v26 }
 0x126   : > { %1312 = vst.msk [vmem:[%s1862_s27 + $0xdc] sm:$0xf] %vm1256_vm1, %v1574_v33  ;;  %v957_v39 = vsel %vm829_vm3, %v637_v18, %v893_v35  ;;  %v989_v40 = vsel %vm861_vm4, %v765_v19, %v925_v36  ;;  %vm832_vm7 = vcmp.gt.f32.partialorder %v650_v41, 0.0  ;;  %v896_v50 = vmul.f32 0.1, %v650_v41 }
 0x127   : > { %v1540_v43 = vpack.c.bf16 %v957_v39, %v957_v39  ;;  %v1572_v44 = vpack.c.bf16 %v989_v40, %v989_v40  ;;  %v962_v45 = vsel %vm834_vm5, %v658_v25, %v898_v37  ;;  %v994_v46 = vsel %vm866_vm6, %v786_v26, %v930_v38 }
 0x128   : > { %v1545_v48 = vpack.c.bf16 %v962_v45, %v962_v45  ;;  %v1577_v49 = vpack.c.bf16 %v994_v46, %v994_v46  ;;  %vm864_vm8 = vcmp.gt.f32.partialorder %v778_v42, 0.0  ;;  %v928_v51 = vmul.f32 0.1, %v778_v42 }
 0x129   : > { %1278 = vst.msk [vmem:[%s1862_s27 + $0x54] sm:$0xf] %vm1256_vm1, %v1540_v43  ;;  %1310 = vst.msk [vmem:[%s1862_s27 + $0xd4] sm:$0xf] %vm1256_vm1, %v1572_v44  ;;  %v789_v52 = vadd.f32 %v1999_v59, %v1850_v34  ;;  %v960_v54 = vsel %vm832_vm7, %v650_v41, %v896_v50  ;;  %v653_v55 = vadd.f32 %v1850_v34, %v2001_v60  ;;  %vm835_vm9 = vcmp.gt.f32.partialorder %v661_v47, 0.0 }
 0x12a   : > { %1283 = vst.msk [vmem:[%s1862_s27 + $0x68] sm:$0xf] %vm1256_vm1, %v1545_v48  ;;  %1315 = vst.msk [vmem:[%s1862_s27 + $0xe8] sm:$0xf] %vm1256_vm1, %v1577_v49  ;;  %v781_v56 = vadd.f32 %v1850_v34, %v2005_v62  ;;  %v674_v57 = vadd.f32 %v1651_v12, %v1850_v34  ;;  %v1543_v58 = vpack.c.bf16 %v960_v54, %v960_v54  ;;  %v899_v61 = vmul.f32 0.1, %v661_v47 }
 0x12b   : > { %v992_v53 = vsel %vm864_vm8, %v778_v42, %v928_v51  ;;  %vm867_vm10 = vcmp.gt.f32.partialorder %v789_v52, 0.0  ;;  %v931_v59 = vmul.f32 0.1, %v789_v52  ;;  %vm833_vm11 = vcmp.gt.f32.partialorder %v653_v55, 0.0 }
 0x12c   : > { %v1575_v63 = vpack.c.bf16 %v992_v53, %v992_v53  ;;  %1281 = vst.msk [vmem:[%s1862_s27 + $0x60] sm:$0xf] %vm1256_vm1, %v1543_v58  ;;  %v963_v0 = vsel %vm835_vm9, %v661_v47, %v899_v61  ;;  %v897_v1 = vmul.f32 0.1, %v653_v55  ;;  %vm865_vm12 = vcmp.gt.f32.partialorder %v781_v56, 0.0 }
 0x12d   : > { %v929_v60 = vmul.f32 0.1, %v781_v56  ;;  %v1546_v62 = vpack.c.bf16 %v963_v0, %v963_v0  ;;  %v995_v2 = vsel %vm867_vm10, %v789_v52, %v931_v59  ;;  %vm838_vm13 = vcmp.gt.f32.partialorder %v674_v57, 0.0 }
 0x12e   : > { %1313 = vst.msk [vmem:[%s1862_s27 + $0xe0] sm:$0xf] %vm1256_vm1, %v1575_v63  ;;  %v902_v3 = vmul.f32 0.1, %v674_v57  ;;  %v1578_v4 = vpack.c.bf16 %v995_v2, %v995_v2  ;;  %v961_v5 = vsel %vm833_vm11, %v653_v55, %v897_v1  ;;  %v802_v7 = vadd.f32 %v2019_v16, %v1850_v34 }
 0x12f   : > { %v993_v6 = vsel %vm865_vm12, %v781_v56, %v929_v60  ;;  %1284 = vst.msk [vmem:[%s1862_s27 + $0x6c] sm:$0xf] %vm1256_vm1, %v1546_v62  ;;  %v1544_v8 = vpack.c.bf16 %v961_v5, %v961_v5  ;;  %v666_v11 = vadd.f32 %v1850_v34, %v2029_v20  ;;  %v794_v14 = vadd.f32 %v1850_v34, %v2031_v21 }
 0x130   : > { %v1576_v9 = vpack.c.bf16 %v993_v6, %v993_v6  ;;  %v966_v10 = vsel %vm838_vm13, %v674_v57, %v902_v3  ;;  %1316 = vst.msk [vmem:[%s1862_s27 + $0xec] sm:$0xf] %vm1256_vm1, %v1578_v4  ;;  %vm870_vm14 = vcmp.gt.f32.partialorder %v802_v7, 0.0  ;;  %v934_v13 = vmul.f32 0.1, %v802_v7 }
 0x131   : > { %v1549_v12 = vpack.c.bf16 %v966_v10, %v966_v10  ;;  %1282 = vst.msk [vmem:[%s1862_s27 + $0x64] sm:$0xf] %vm1256_vm1, %v1544_v8  ;;  %vm836_vm15 = vcmp.gt.f32.partialorder %v666_v11, 0.0  ;;  %v900_v15 = vmul.f32 0.1, %v666_v11  ;;  %v677_v16 = vadd.f32 %v2039_v24, %v1850_v34 }
 0x132   : > { %1314 = vst.msk [vmem:[%s1862_s27 + $0xe4] sm:$0xf] %vm1256_vm1, %v1576_v9  ;;  %v805_v17 = vadd.f32 %v2041_v27, %v1850_v34  ;;  %v998_v18 = vsel %vm870_vm14, %v802_v7, %v934_v13  ;;  %vm868_vm0 = vcmp.gt.f32.partialorder %v794_v14, 0.0  ;;  %v932_v19 = vmul.f32 0.1, %v794_v14 }
 0x133   : > { %1287 = vst.msk [vmem:[%s1862_s27 + $0x78] sm:$0xf] %vm1256_vm1, %v1549_v12  ;;  %v669_v20 = vadd.f32 %v1850_v34, %v2043_v31  ;;  %v1581_v21 = vpack.c.bf16 %v998_v18, %v998_v18  ;;  %v964_v22 = vsel %vm836_vm15, %v666_v11, %v900_v15  ;;  %vm839_vm2 = vcmp.gt.f32.partialorder %v677_v16, 0.0 }
 0x134   : > { %v903_v23 = vmul.f32 0.1, %v677_v16  ;;  %v1547_v25 = vpack.c.bf16 %v964_v22, %v964_v22  ;;  %v996_v26 = vsel %vm868_vm0, %v794_v14, %v932_v19  ;;  %vm871_vm3 = vcmp.gt.f32.partialorder %v805_v17, 0.0 }
 0x135   : > { %v935_v24 = vmul.f32 0.1, %v805_v17  ;;  %1319 = vst.msk [vmem:[%s1862_s27 + $0xf8] sm:$0xf] %vm1256_vm1, %v1581_v21  ;;  %v1579_v27 = vpack.c.bf16 %v996_v26, %v996_v26  ;;  %vm837_vm4 = vcmp.gt.f32.partialorder %v669_v20, 0.0  ;;  %v797_v33 = vadd.f32 %v1850_v34, %v2045_v32 }
 0x136   : > { %v967_v28 = vsel %vm839_vm2, %v677_v16, %v903_v23  ;;  %v901_v29 = vmul.f32 0.1, %v669_v20  ;;  %1285 = vst.msk [vmem:[%s1862_s27 + $0x70] sm:$0xf] %vm1256_vm1, %v1547_v25 }
 0x137   : > { %v1550_v30 = vpack.c.bf16 %v967_v28, %v967_v28  ;;  %v999_v31 = vsel %vm871_vm3, %v805_v17, %v935_v24  ;;  %1317 = vst.msk [vmem:[%s1862_s27 + $0xf0] sm:$0xf] %vm1256_vm1, %v1579_v27  ;;  %vm869_vm5 = vcmp.gt.f32.partialorder %v797_v33, 0.0  ;;  %v933_v38 = vmul.f32 0.1, %v797_v33 }
 0x138   : > { %v1582_v35 = vpack.c.bf16 %v999_v31, %v999_v31  ;;  %v965_v36 = vsel %vm837_vm4, %v669_v20, %v901_v29 }
 0x139   : > { %1288 = vst.msk [vmem:[%s1862_s27 + $0x7c] sm:$0xf] %vm1256_vm1, %v1550_v30  ;;  %v1548_v37 = vpack.c.bf16 %v965_v36, %v965_v36  ;;  %v997_v39 = vsel %vm869_vm5, %v797_v33, %v933_v38 }
 0x13a   : > { %1320 = vst.msk [vmem:[%s1862_s27 + $0xfc] sm:$0xf] %vm1256_vm1, %v1582_v35  ;;  %v1580_v40 = vpack.c.bf16 %v997_v39, %v997_v39 }
 0x13b   : > { %1286 = vst.msk [vmem:[%s1862_s27 + $0x74] sm:$0xf] %vm1256_vm1, %v1548_v37 }
 0x13c   : > { %1318 = vst.msk [vmem:[%s1862_s27 + $0xf4] sm:$0xf] %vm1256_vm1, %v1580_v40 }
 0x13d PF: > { %s13_s12 = sadd.s32 1, %s1737_s12  }
 0x13e   : > { %p10_p4 = scmp.ge.s32.totalorder %s13_s12, 4  }
 0x140   :  { %12 = sbr.rel (!%p10_p4) target bundleno = 1 (0x1), region = 62 }

// kernel: _encoder_forward_arrays.4
= control target key start
LH: loop header
LB: loop body
LE: loop exit
PB: predicated region body
PF: predicated region fallthrough
CT: control target
= control target key end

     0   :  { %s1578_s12 = smov 0   ;;  %s1836_s0 = inlined_call_operand.vmem [shape: bf16[128,864], index: 0, kind: input, shape index: {}]   ;;  %s1837_s1 = inlined_call_operand.vmem [shape: bf16[864,64], index: 1, kind: input, shape index: {}]   ;;  %s1838_s2 = inlined_call_operand.vmem [shape: f32[1,64], index: 2, kind: input, shape index: {}]   ;;  %s1839_s3 = inlined_call_operand.vmem [shape: bf16[128,64], index: 3, kind: output, shape index: {}]  }
   0x1 LB: > { %s1183_s13 = sadd.s32 4294967295, %s1556_s12   ;;  %p1187_p0 = scmp.ge.s32.totalorder %s1556_s12, 1  ;;  %s1556_s12 = sphi %s1578_s12, %s13_s12  }
   0x2   : > { %p139_p1 = scmp.lt.s32.totalorder %s1556_s12, 3 }
   0x4   : > { %p140_p2 = pnand %p1187_p0, %p139_p1 }
   0x5   : > { %v1456_v0 = vld [vmem:[%s1837_s1 + $0x40] sm:$0xff] (!%p140_p2)   ;;  %v1460_v4 = vld [vmem:[%s1837_s1 + $0x48] sm:$0xff] (!%p140_p2)   ;;  %v1464_v8 = vld [vmem:[%s1837_s1 + $0x50] sm:$0xff] (!%p140_p2)   ;;  %s1188_s17 = sshll.u32 (!%p140_p2), %s1183_s13, 3  ;;  %vm789_vm0 = vcmask (!%p140_p2), 785408   ;;  %vm1118_vm2 = vcmask (!%p140_p2), 519168  }
   0x6   : > { %143 = sbr.rel (%p140_p2) target bundleno = 321 (0x141), region = 32  ;;  %v1457_v1 = vld [vmem:[%s1837_s1] sm:$0xff] (!%p140_p2)   ;;  %1297 = vmatprep.subr.bf16.mxu0 (!%p140_p2), %v1456_v0  ;;  %v1461_v5 = vld [vmem:[%s1837_s1 + $0x8] sm:$0xff] (!%p140_p2)   ;;  %v1465_v9 = vld [vmem:[%s1837_s1 + $0x10] sm:$0xff] (!%p140_p2)   ;;  %p165_p3 = scmp.lt.s32.totalorder (!%p140_p2), %s1188_s17, 15 }
   0x7   : > { %v1458_v2 = vld [vmem:[%s1837_s1 + $0xc0] sm:$0xff] (!%p140_p2)   ;;  %1298 = vmatpush3.bf16.msra.mxu0 (!%p140_p2), %v1457_v1  ;;  %v1462_v6 = vld [vmem:[%s1837_s1 + $0xc8] sm:$0xff] (!%p140_p2)   ;;  %v1466_v10 = vld [vmem:[%s1837_s1 + $0xd0] sm:$0xff] (!%p140_p2)  }
   0x8   : > { %v1459_v3 = vld [vmem:[%s1837_s1 + $0x80] sm:$0xff] (!%p140_p2)   ;;  %1337 = vmatprep.subr.bf16.mxu1 (!%p140_p2), %v1458_v2  ;;  %1299 = vmatprep.subr.bf16.mxu0 (!%p140_p2), %v1460_v4  ;;  %v1463_v7 = vld [vmem:[%s1837_s1 + $0x88] sm:$0xff] (!%p140_p2)   ;;  %v1467_v11 = vld [vmem:[%s1837_s1 + $0x90] sm:$0xff] (!%p140_p2)  }
   0x9   : > { %1338 = vmatpush3.bf16.msra.mxu1 (!%p140_p2), %v1459_v3  ;;  %v1468_v12 = vld [vmem:[%s1837_s1 + $0x58] sm:$0xff] (!%p140_p2)   ;;  %v1472_v16 = vld [vmem:[%s1837_s1 + $0x60] sm:$0xff] (!%p140_p2)   ;;  %v1476_v20 = vld [vmem:[%s1837_s1 + $0x68] sm:$0xff] (!%p140_p2)  }
   0xa   : > { %1339 = vmatprep.subr.bf16.mxu1 (!%p140_p2), %v1462_v6  ;;  %v1469_v13 = vld [vmem:[%s1837_s1 + $0x18] sm:$0xff] (!%p140_p2)   ;;  %v1473_v17 = vld [vmem:[%s1837_s1 + $0x20] sm:$0xff] (!%p140_p2)   ;;  %v1477_v21 = vld [vmem:[%s1837_s1 + $0x28] sm:$0xff] (!%p140_p2)  }
   0xb   : > { %1300 = vmatpush3.bf16.msra.mxu0 (!%p140_p2), %v1461_v5  ;;  %v1470_v14 = vld [vmem:[%s1837_s1 + $0xd8] sm:$0xff] (!%p140_p2)   ;;  %v1474_v18 = vld [vmem:[%s1837_s1 + $0xe0] sm:$0xff] (!%p140_p2)   ;;  %v1478_v22 = vld [vmem:[%s1837_s1 + $0xe8] sm:$0xff] (!%p140_p2)  }
   0xc   : > { %1301 = vmatprep.subr.bf16.mxu0 (!%p140_p2), %v1464_v8  ;;  %v1471_v15 = vld [vmem:[%s1837_s1 + $0x98] sm:$0xff] (!%p140_p2)   ;;  %v1475_v19 = vld [vmem:[%s1837_s1 + $0xa0] sm:$0xff] (!%p140_p2)   ;;  %v1479_v23 = vld [vmem:[%s1837_s1 + $0xa8] sm:$0xff] (!%p140_p2)  }
   0xd   : > { %1340 = vmatpush3.bf16.msra.mxu1 %v1463_v7  ;;  %s1841_s17 = smov (!%p165_p3, %s1188_s17), 15  ;;  %v1480_v24 = vld [vmem:[%s1837_s1 + $0x70] sm:$0xff]   ;;  %v1484_v28 = vld [vmem:[%s1837_s1 + $0x78] sm:$0xff]   ;;  %v1491_v34 = vld [vmem:[%s1837_s1 + $0x140] sm:$0xff]  }
   0xe   : > { %1341 = vmatprep.subr.bf16.mxu1 %v1466_v10  ;;  %s1447_s14 = smul.u32 28, %s1841_s17  ;;  %v1481_v25 = vld [vmem:[%s1837_s1 + $0x30] sm:$0xff]   ;;  %v1485_v29 = vld [vmem:[%s1837_s1 + $0x38] sm:$0xff]   ;;  %v1495_v37 = vld [vmem:[%s1837_s1 + $0x100] sm:$0xff]  }
   0xf   : > { %1302 = vmatpush3.bf16.msra.mxu0 %v1465_v9  ;;  %v1482_v26 = vld [vmem:[%s1837_s1 + $0xf0] sm:$0xff]   ;;  %v1486_v30 = vld [vmem:[%s1837_s1 + $0xf8] sm:$0xff]   ;;  %v1496_v38 = vld [vmem:[%s1837_s1 + $0x148] sm:$0xff]  }
  0x10   : > { %1303 = vmatprep.subr.bf16.mxu0 %v1468_v12  ;;  %v1483_v27 = vld [vmem:[%s1837_s1 + $0xb0] sm:$0xff]   ;;  %s1681_s13 = scalar_lea.vmem %s1836_s0, %s1447_s14  ;;  %v1490_v33 = vld [vmem:[%s1837_s1 + $0xb8] sm:$0xff]   ;;  %v1497_v39 = vld [vmem:[%s1837_s1 + $0x108] sm:$0xff]  }
  0x11   : > { %1342 = vmatpush3.bf16.msra.mxu1 %v1467_v11  ;;  %v1487_v31 = vld [vmem:[%s1681_s13] ss:$28 sps:$4 sm:$0xff]   ;;  %v1492_v35 = vld [vmem:[%s1681_s13 + $0x8] ss:$28 sps:$4 sm:$0xff]   ;;  %v1500_v41 = vld [vmem:[%s1681_s13 + $0x38] ss:$28 sps:$4 sm:$0xff]  }
  0x12   : > { %1343 = vmatprep.subr.bf16.mxu1 %v1470_v14  ;;  %v1489_v32 = vld [vmem:[%s1681_s13 + $0x4] ss:$28 sps:$4 sm:$0xff]   ;;  %v1494_v36 = vld [vmem:[%s1681_s13 + $0xc] ss:$28 sps:$4 sm:$0xff]   ;;  %v1498_v40 = vld [vmem:[%s1681_s13 + $0x3c] ss:$28 sps:$4 sm:$0xff]  }
  0x13   : > { %1304 = vmatpush3.bf16.msra.mxu0 %v1469_v13  ;;  %834 = vmatprep.mubr.bf16.mxu0 %v1489_v32  ;;  %v1501_v42 = vld [vmem:[%s1837_s1 + $0x150] sm:$0xff]   ;;  %v1502_v43 = vld [vmem:[%s1681_s13 + $0x44] ss:$28 sps:$4 sm:$0xff]   ;;  %v1506_v46 = vld [vmem:[%s1837_s1 + $0x158] sm:$0xff]  }
  0x14   : > { %1305 = vmatprep.subr.bf16.mxu0 %v1472_v16  ;;  %899 = vmatprep.mubr.bf16.mxu1 %v1494_v36  ;;  %v1504_v44 = vld [vmem:[%s1837_s1 + $0x110] sm:$0xff]   ;;  %v1505_v45 = vld [vmem:[%s1681_s13 + $0x40] ss:$28 sps:$4 sm:$0xff]   ;;  %v1513_v52 = vld [vmem:[%s1837_s1 + $0x188] sm:$0xff]  }
  0x15   : > { %1344 = vmatpush3.bf16.msra.mxu1 %v1471_v15  ;;  %v1507_v47 = vld [vmem:[%s1837_s1 + $0x180] sm:$0xff]   ;;  %v1508_v48 = vld [vmem:[%s1837_s1 + $0x118] sm:$0xff]   ;;  %v1509_v49 = vld [vmem:[%s1681_s13 + $0x74] ss:$28 sps:$4 sm:$0xff]  }
  0x16   : > { %1345 = vmatprep.subr.bf16.mxu1 %v1474_v18  ;;  %v1511_v50 = vld [vmem:[%s1681_s13 + $0x70] ss:$28 sps:$4 sm:$0xff]   ;;  %v1512_v51 = vld [vmem:[%s1837_s1 + $0x160] sm:$0xff]   ;;  %v1514_v53 = vld [vmem:[%s1681_s13 + $0x7c] ss:$28 sps:$4 sm:$0xff]  }
  0x17   : > { %1306 = vmatpush3.bf16.msra.mxu0 %v1473_v17  ;;  %v1516_v54 = vld [vmem:[%s1837_s1 + $0x120] sm:$0xff]   ;;  %v1517_v55 = vld [vmem:[%s1681_s13 + $0x78] ss:$28 sps:$4 sm:$0xff]   ;;  %v1518_v56 = vld [vmem:[%s1837_s1 + $0x168] sm:$0xff]  }
  0x18   : > { %1307 = vmatprep.subr.bf16.mxu0 %v1476_v20  ;;  %v1519_v57 = vld [vmem:[%s1837_s1 + $0x190] sm:$0xff]   ;;  %v1520_v58 = vld [vmem:[%s1837_s1 + $0x128] sm:$0xff]   ;;  %v1525_v62 = vld [vmem:[%s1837_s1 + $0x198] sm:$0xff]  }
  0x19   : > { %1346 = vmatpush3.bf16.msra.mxu1 %v1475_v19  ;;  %v1521_v59 = vld [vmem:[%s1681_s13 + $0xac] ss:$28 sps:$4 sm:$0xff]   ;;  %v1524_v61 = vld [vmem:[%s1837_s1 + $0x170] sm:$0xff]   ;;  %v1530_v2 = vld [vmem:[%s1837_s1 + $0x178] sm:$0xff]  }
  0x1a   : > { %1347 = vmatprep.subr.bf16.mxu1 %v1478_v22  ;;  %v1523_v60 = vld [vmem:[%s1681_s13 + $0xa8] ss:$28 sps:$4 sm:$0xff]   ;;  %v1526_v63 = vld [vmem:[%s1681_s13 + $0xb4] ss:$28 sps:$4 sm:$0xff]   ;;  %v1532_v4 = vld [vmem:[%s1837_s1 + $0x138] sm:$0xff]  }
  0x1b   : > { %1308 = vmatpush3.bf16.msra.mxu0 %v1477_v21  ;;  %v1528_v0 = vld [vmem:[%s1837_s1 + $0x130] sm:$0xff]   ;;  %v1531_v3 = vld [vmem:[%s1837_s1 + $0x1a0] sm:$0xff]   ;;  %v1536_v7 = vld [vmem:[%s1837_s1 + $0x1a8] sm:$0xff]  }
  0x1c   : > { %1309 = vmatprep.subr.bf16.mxu0 %v1480_v24  ;;  %v1529_v1 = vld [vmem:[%s1681_s13 + $0xb0] ss:$28 sps:$4 sm:$0xff]   ;;  %v1537_v8 = vld [vmem:[%s1681_s13 + $0x18] ss:$28 sps:$4 sm:$0xff]   ;;  %v1545_v11 = vld [vmem:[%s1681_s13 + $0x88] ss:$28 sps:$4 sm:$0xff]  }
  0x1d   : > { %1348 = vmatpush3.bf16.msra.mxu1 %v1479_v23  ;;  %v1533_v5 = vld [vmem:[%s1681_s13 + $0x10] ss:$28 sps:$4 sm:$0xff]   ;;  %v1541_v12 = vld [vmem:[%s1681_s13 + $0x48] ss:$28 sps:$4 sm:$0xff]   ;;  %v1546_v14 = vld [vmem:[%s1681_s13 + $0xc0] ss:$28 sps:$4 sm:$0xff]  }
  0x1e   : > { %1349 = vmatprep.subr.bf16.mxu1 %v1482_v26  ;;  %v1535_v6 = vld [vmem:[%s1681_s13 + $0x14] ss:$28 sps:$4 sm:$0xff]   ;;  %v1539_v10 = vld [vmem:[%s1681_s13 + $0x4c] ss:$28 sps:$4 sm:$0xff]   ;;  %v1542_v13 = vld [vmem:[%s1681_s13 + $0x84] ss:$28 sps:$4 sm:$0xff]  }
  0x1f   : > { %1310 = vmatpush3.bf16.msra.mxu0 %v1481_v25  ;;  %v1538_v9 = vld [vmem:[%s1681_s13 + $0x50] ss:$28 sps:$4 sm:$0xff]   ;;  %v1544_v15 = vld [vmem:[%s1681_s13 + $0x80] ss:$28 sps:$4 sm:$0xff]   ;;  %v1549_v17 = vld [vmem:[%s1681_s13 + $0xb8] ss:$28 sps:$4 sm:$0xff]  }
  0x20   : > { %1311 = vmatprep.subr.bf16.mxu0 %v1484_v28  ;;  %v1547_v16 = vld [vmem:[%s1681_s13 + $0xbc] ss:$28 sps:$4 sm:$0xff]   ;;  %v1192_v19 = vld [vmem:[%s1838_s2] ss:$0 sm:$0xff]  ;;  %s1191_s13 = sshll.u32 %s1841_s17, 2 }
  0x21   : > { %1350 = vmatpush3.bf16.msra.mxu1 %v1483_v27  ;;  %s1809_s5 = scalar_lea.vmem %s1839_s3, %s1191_s13 }
  0x22   : > { %1351 = vmatprep.subr.bf16.mxu1 %v1486_v30 }
  0x23   : > { %1312 = vmatpush3.bf16.msra.mxu0 %v1485_v29 }
  0x24   : > { %1377 = vmatprep.subr.bf16.mxu0 %v1491_v34 }
  0x25   : > { %1352 = vmatpush3.bf16.msra.mxu1 %v1490_v33 }
  0x26   : > { %835 = vmatmul.mubr.bf16.vlgmr.msra.gmra.mrb[0].mxu0 %v1487_v31  ;;  %1427 = vmatprep.subr.bf16.mxu1 %v1507_v47 }
  0x27   : > { %1378 = vmatpush3.bf16.msra.mxu0 %v1495_v37  ;;  %842 = vmatprep.mubr.bf16.mxu0 %v1498_v40 }
  0x28   : > { %900 = vmatmul.mubr.bf16.vlgmr.msra.gmra.mrb[0].mxu1 %v1492_v35  ;;  %1379 = vmatprep.subr.bf16.mxu0 %v1496_v38 }
  0x29   : > { %907 = vmatprep.mubr.bf16.mxu1 %v1502_v43  ;;  %1428 = vmatpush3.bf16.msra.mxu1 %v1507_v47 }
  0x2a   : > { %1429 = vmatprep.subr.bf16.mxu1 %v1513_v52 }
  0x2b   : > { %1380 = vmatpush3.bf16.msra.mxu0 %v1497_v39 }
  0x2c   : > { %1381 = vmatprep.subr.bf16.mxu0 %v1501_v42 }
  0x2d   : > { %1430 = vmatpush3.bf16.msra.mxu1 %v1513_v52 }
  0x2e   : > { %843 = vmatmul.mubr.bf16.gmra.mrb[4].mxu0 %v1500_v41  ;;  %1431 = vmatprep.subr.bf16.mxu1 %v1519_v57 }
  0x2f   : > { %1382 = vmatpush3.bf16.msra.mxu0 %v1504_v44  ;;  %850 = vmatprep.mubr.bf16.mxu0 %v1509_v49 }
  0x30   : > { %908 = vmatmul.mubr.bf16.gmra.mrb[4].mxu1 %v1505_v45  ;;  %1383 = vmatprep.subr.bf16.mxu0 %v1506_v46 }
  0x31   : > { %915 = vmatprep.mubr.bf16.mxu1 %v1514_v53  ;;  %1432 = vmatpush3.bf16.msra.mxu1 %v1519_v57 }
  0x32   : > { %1433 = vmatprep.subr.bf16.mxu1 %v1525_v62 }
  0x33   : > { %1384 = vmatpush3.bf16.msra.mxu0 %v1508_v48 }
  0x34   : > { %1385 = vmatprep.subr.bf16.mxu0 %v1512_v51 }
  0x35   : > { %1434 = vmatpush3.bf16.msra.mxu1 %v1525_v62 }
  0x36   : > { %851 = vmatmul.mubr.bf16.gmra.mrb[8].mxu0 %v1511_v50  ;;  %1435 = vmatprep.subr.bf16.mxu1 %v1531_v3 }
  0x37   : > { %1386 = vmatpush3.bf16.msra.mxu0 %v1516_v54  ;;  %858 = vmatprep.mubr.bf16.mxu0 %v1521_v59 }
  0x38   : > { %916 = vmatmul.mubr.bf16.gmra.mrb[8].mxu1 %v1517_v55  ;;  %1387 = vmatprep.subr.bf16.mxu0 %v1518_v56 }
  0x39   : > { %923 = vmatprep.mubr.bf16.mxu1 %v1526_v63  ;;  %1436 = vmatpush3.bf16.msra.mxu1 %v1531_v3 }
  0x3a   : > { %1437 = vmatprep.subr.bf16.mxu1 %v1536_v7 }
  0x3b   : > { %1388 = vmatpush3.bf16.msra.mxu0 %v1520_v58 }
  0x3c   : > { %1389 = vmatprep.subr.bf16.mxu0 %v1524_v61 }
  0x3d   : > { %1438 = vmatpush3.bf16.msra.mxu1 %v1536_v7 }
  0x3e   : > { %859 = vmatmul.mubr.bf16.gmra.mrb[12].mxu0 %v1523_v60 }
  0x3f   : > { %1390 = vmatpush3.bf16.msra.mxu0 %v1528_v0  ;;  %964 = vmatprep.mubr.bf16.mxu0 %v1535_v6 }
  0x40   : > { %924 = vmatmul.mubr.bf16.gmra.mrb[12].mxu1 %v1529_v1  ;;  %1391 = vmatprep.subr.bf16.mxu0 %v1530_v2 }
  0x41   : > { %1439 = vmatprep.mubr.msk.bf16.mxu1 %vm789_vm0, %v1537_v8 }
  0x43   : > { %1392 = vmatpush3.bf16.msra.mxu0 %v1532_v4 }
  0x46   : > { %965 = vmatmul.mubr.bf16.vlgmr.msra.gmra.mrb[16].mxu0 %v1533_v5 }
  0x47   : > { %972 = vmatprep.mubr.bf16.mxu0 %v1539_v10 }
  0x48   : > { %1440 = vmatmul.mubr.msk.bf16.vlgmr.msra.gmra.mrb[16].mxu1 %vm789_vm0, %v1538_v9 }
  0x49   : > { %1443 = vmatprep.mubr.msk.bf16.mxu1 %vm789_vm0, %v1545_v11 }
  0x4e   : > { %973 = vmatmul.mubr.bf16.gmra.mrb[20].mxu0 %v1541_v12 }
  0x4f   : > { %980 = vmatprep.mubr.bf16.mxu0 %v1542_v13 }
  0x50   : > { %1444 = vmatmul.mubr.msk.bf16.gmra.mrb[20].mxu1 %vm789_vm0, %v1546_v14 }
  0x56   : > { %981 = vmatmul.mubr.bf16.gmra.mrb[24].mxu0 %v1544_v15 }
  0x57   : > { %988 = vmatprep.mubr.bf16.mxu0 %v1547_v16 }
  0x5e   : > { %989 = vmatmul.mubr.bf16.gmra.mrb[28].mxu0 %v1549_v17 }
  0xf9   : > { %v1313_v18 = vpop.f32.mrb[0].mxu0 }
  0xfa   : > { %v1314_v20 = vpop.f32.mrb[1].mxu0 }
  0xfb   : > { %v1315_v21 = vadd.f32 %v1314_v20, %v1313_v18  ;;  %v1316_v22 = vpop.f32.mrb[2].mxu0  ;;  %v1353_v23 = vpop.f32.mrb[0].mxu1 }
  0xfc   : > { %v1317_v24 = vpop.f32.mrb[3].mxu0  ;;  %v1354_v27 = vpop.f32.mrb[1].mxu1 }
  0xfd   : > { %v837_v25 = vadd.f32 %v1315_v21, %v1192_v19  ;;  %v1318_v26 = vadd.f32 %v1317_v24, %v1316_v22  ;;  %v1355_v28 = vadd.f32 %v1354_v27, %v1353_v23  ;;  %v1356_v29 = vpop.f32.mrb[2].mxu1 }
  0xfe   : > { %v1357_v31 = vpop.f32.mrb[3].mxu1 }
  0xff   : > { %v840_v30 = vadd.f32 %v1318_v26, %v1192_v19  ;;  %v902_v32 = vadd.f32 %v1355_v28, %v837_v25  ;;  %v1358_v33 = vadd.f32 %v1357_v31, %v1356_v29 }
 0x101   : > { %v1319_v34 = vpop.f32.mrb[4].mxu0  ;;  %v905_v35 = vadd.f32 %v1358_v33, %v840_v30 }
 0x102   : > { %v1320_v36 = vpop.f32.mrb[5].mxu0 }
 0x103   : > { %v1321_v37 = vadd.f32 %v1320_v36, %v1319_v34  ;;  %v1322_v38 = vpop.f32.mrb[6].mxu0  ;;  %v1359_v39 = vpop.f32.mrb[4].mxu1 }
 0x104   : > { %v1323_v40 = vpop.f32.mrb[7].mxu0  ;;  %v1360_v43 = vpop.f32.mrb[5].mxu1 }
 0x105   : > { %v845_v41 = vadd.f32 %v1321_v37, %v1192_v19  ;;  %v1324_v42 = vadd.f32 %v1323_v40, %v1322_v38  ;;  %v1361_v44 = vadd.f32 %v1360_v43, %v1359_v39  ;;  %v1362_v45 = vpop.f32.mrb[6].mxu1 }
 0x106   : > { %v1363_v47 = vpop.f32.mrb[7].mxu1 }
 0x107   : > { %v848_v46 = vadd.f32 %v1324_v42, %v1192_v19  ;;  %v1793_v48 = vadd.f32 %v1361_v44, %v845_v41  ;;  %v1364_v49 = vadd.f32 %v1363_v47, %v1362_v45 }
 0x109   : > { %v1325_v50 = vpop.f32.mrb[8].mxu0  ;;  %v1795_v51 = vadd.f32 %v1364_v49, %v848_v46 }
 0x10a   : > { %v1326_v52 = vpop.f32.mrb[9].mxu0 }
 0x10b   : > { %v1327_v53 = vadd.f32 %v1326_v52, %v1325_v50  ;;  %v1328_v54 = vpop.f32.mrb[10].mxu0  ;;  %v1365_v55 = vpop.f32.mrb[8].mxu1 }
 0x10c   : > { %v1329_v56 = vpop.f32.mrb[11].mxu0  ;;  %v1366_v59 = vpop.f32.mrb[9].mxu1 }
 0x10d   : > { %v853_v57 = vadd.f32 %v1327_v53, %v1192_v19  ;;  %v1330_v58 = vadd.f32 %v1329_v56, %v1328_v54  ;;  %v1367_v60 = vadd.f32 %v1366_v59, %v1365_v55  ;;  %v1368_v61 = vpop.f32.mrb[10].mxu1 }
 0x10e   : > { %v1369_v63 = vpop.f32.mrb[11].mxu1 }
 0x10f   : > { %v856_v62 = vadd.f32 %v1330_v58, %v1192_v19  ;;  %v1797_v0 = vadd.f32 %v1367_v60, %v853_v57  ;;  %v1370_v1 = vadd.f32 %v1369_v63, %v1368_v61 }
 0x111   : > { %v1331_v2 = vpop.f32.mrb[12].mxu0  ;;  %v1799_v3 = vadd.f32 %v1370_v1, %v856_v62 }
 0x112   : > { %v1332_v4 = vpop.f32.mrb[13].mxu0 }
 0x113   : > { %v1333_v5 = vadd.f32 %v1332_v4, %v1331_v2  ;;  %v1334_v6 = vpop.f32.mrb[14].mxu0  ;;  %v1371_v7 = vpop.f32.mrb[12].mxu1 }
 0x114   : > { %v1335_v8 = vpop.f32.mrb[15].mxu0  ;;  %v1372_v11 = vpop.f32.mrb[13].mxu1 }
 0x115   : > { %v861_v9 = vadd.f32 %v1333_v5, %v1192_v19  ;;  %v1336_v10 = vadd.f32 %v1335_v8, %v1334_v6  ;;  %v1373_v12 = vadd.f32 %v1372_v11, %v1371_v7  ;;  %v1374_v13 = vpop.f32.mrb[14].mxu1 }
 0x116   : > { %v1375_v15 = vpop.f32.mrb[15].mxu1 }
 0x117   : > { %v864_v14 = vadd.f32 %v1336_v10, %v1192_v19  ;;  %v1801_v16 = vadd.f32 %v1373_v12, %v861_v9  ;;  %v1376_v17 = vadd.f32 %v1375_v15, %v1374_v13 }
 0x119   : > { %v1803_v18 = vadd.f32 %v1376_v17, %v864_v14  ;;  %v1393_v20 = vpop.f32.mrb[16].mxu0 }
 0x11a   : > { %v1394_v21 = vpop.f32.mrb[17].mxu0 }
 0x11b   : > { %v1395_v22 = vadd.f32 %v1394_v21, %v1393_v20  ;;  %v1396_v23 = vpop.f32.mrb[18].mxu0  ;;  %v1441_v25 = vpop.f32.mrb[16].mxu1 }
 0x11c   : > { %v1397_v24 = vpop.f32.mrb[19].mxu0  ;;  %v1031_v28 = vpop.f32.mrb[17].mxu1 }
 0x11d   : > { %v1398_v26 = vadd.f32 %v1397_v24, %v1396_v23  ;;  %v967_v27 = vadd.f32 %v1395_v22, %v902_v32  ;;  %v1442_v29 = vpop.f32.mrb[18].mxu1 }
 0x11e   : > { %v1034_v19 = vpop.f32.mrb[19].mxu1 }
 0x11f   : > { %v1032_v30 = vadd.f32 %v1031_v28, %v967_v27  ;;  %v970_v31 = vadd.f32 %v1398_v26, %v905_v35 }
 0x121   : > { %vm1062_vm1 = vcmp.gt.f32.partialorder %v1032_v30, 0.0  ;;  %v1070_v33 = vmul.f32 0.1, %v1032_v30  ;;  %v1035_v34 = vadd.f32 %v1034_v19, %v970_v31  ;;  %v1399_v36 = vpop.f32.mrb[20].mxu0 }
 0x122   : > { %v1400_v37 = vpop.f32.mrb[21].mxu0 }
 0x123   : > { %v1078_v38 = vsel %vm1062_vm1, %v1032_v30, %v1070_v33  ;;  %vm1063_vm3 = vcmp.gt.f32.partialorder %v1035_v34, 0.0  ;;  %v1071_v32 = vmul.f32 0.1, %v1035_v34  ;;  %v1401_v39 = vadd.f32 %v1400_v37, %v1399_v36  ;;  %v1402_v35 = vpop.f32.mrb[22].mxu0  ;;  %v1445_v42 = vpop.f32.mrb[20].mxu1 }
 0x124   : > { %v1289_v40 = vpack.c.bf16 %v1078_v38, %v1078_v38  ;;  %v1403_v41 = vpop.f32.mrb[23].mxu0  ;;  %v1047_v46 = vpop.f32.mrb[21].mxu1 }
 0x125   : > { %v1079_v43 = vsel %vm1063_vm3, %v1035_v34, %v1071_v32  ;;  %v975_v44 = vadd.f32 %v1401_v39, %v1793_v48  ;;  %v1404_v45 = vadd.f32 %v1403_v41, %v1402_v35  ;;  %v1446_v49 = vpop.f32.mrb[22].mxu1 }
 0x126   : > { %1119 = vst.msk [vmem:[%s1809_s5] sm:$0xf] %vm1118_vm2, %v1289_v40  ;;  %v1290_v47 = vpack.c.bf16 %v1079_v43, %v1079_v43  ;;  %v1050_v53 = vpop.f32.mrb[23].mxu1 }
 0x127   : > { %v1040_v50 = vadd.f32 %v1441_v25, %v975_v44  ;;  %v978_v52 = vadd.f32 %v1404_v45, %v1795_v51 }
 0x128   : > { %1120 = vst.msk [vmem:[%s1809_s5 + $0x4] sm:$0xf] %vm1118_vm2, %v1290_v47 }
 0x129   : > { %vm1064_vm4 = vcmp.gt.f32.partialorder %v1040_v50, 0.0  ;;  %v1072_v54 = vmul.f32 0.1, %v1040_v50  ;;  %v1043_v55 = vadd.f32 %v1442_v29, %v978_v52  ;;  %v1405_v56 = vpop.f32.mrb[24].mxu0 }
 0x12a   : > { %v1406_v57 = vpop.f32.mrb[25].mxu0 }
 0x12b   : > { %v1080_v48 = vsel %vm1064_vm4, %v1040_v50, %v1072_v54  ;;  %vm1065_vm5 = vcmp.gt.f32.partialorder %v1043_v55, 0.0  ;;  %v1073_v58 = vmul.f32 0.1, %v1043_v55  ;;  %v1407_v59 = vadd.f32 %v1406_v57, %v1405_v56  ;;  %v1408_v60 = vpop.f32.mrb[26].mxu0 }
 0x12c   : > { %v1291_v61 = vpack.c.bf16 %v1080_v48, %v1080_v48  ;;  %v1409_v62 = vpop.f32.mrb[27].mxu0 }
 0x12d   : > { %v1081_v63 = vsel %vm1065_vm5, %v1043_v55, %v1073_v58  ;;  %v1410_v1 = vadd.f32 %v1409_v62, %v1408_v60  ;;  %v983_v51 = vadd.f32 %v1407_v59, %v1797_v0 }
 0x12e   : > { %1121 = vst.msk [vmem:[%s1809_s5 + $0x8] sm:$0xf] %vm1118_vm2, %v1291_v61  ;;  %v1292_v2 = vpack.c.bf16 %v1081_v63, %v1081_v63 }
 0x12f   : > { %v1048_v4 = vadd.f32 %v1047_v46, %v983_v51  ;;  %v986_v5 = vadd.f32 %v1410_v1, %v1799_v3 }
 0x130   : > { %1122 = vst.msk [vmem:[%s1809_s5 + $0xc] sm:$0xf] %vm1118_vm2, %v1292_v2 }
 0x131   : > { %vm1066_vm6 = vcmp.gt.f32.partialorder %v1048_v4, 0.0  ;;  %v1074_v6 = vmul.f32 0.1, %v1048_v4  ;;  %v1051_v7 = vadd.f32 %v1050_v53, %v986_v5  ;;  %v1411_v8 = vpop.f32.mrb[28].mxu0 }
 0x132   : > { %v1412_v9 = vpop.f32.mrb[29].mxu0 }
 0x133   : > { %v1082_v10 = vsel %vm1066_vm6, %v1048_v4, %v1074_v6  ;;  %vm1067_vm7 = vcmp.gt.f32.partialorder %v1051_v7, 0.0  ;;  %v1075_v11 = vmul.f32 0.1, %v1051_v7  ;;  %v1413_v12 = vadd.f32 %v1412_v9, %v1411_v8  ;;  %v1414_v0 = vpop.f32.mrb[30].mxu0 }
 0x134   : > { %v1293_v13 = vpack.c.bf16 %v1082_v10, %v1082_v10  ;;  %v1415_v14 = vpop.f32.mrb[31].mxu0 }
 0x135   : > { %v1083_v15 = vsel %vm1067_vm7, %v1051_v7, %v1075_v11  ;;  %v991_v3 = vadd.f32 %v1413_v12, %v1801_v16  ;;  %v1416_v17 = vadd.f32 %v1415_v14, %v1414_v0 }
 0x136   : > { %1123 = vst.msk [vmem:[%s1809_s5 + $0x10] sm:$0xf] %vm1118_vm2, %v1293_v13  ;;  %v1294_v20 = vpack.c.bf16 %v1083_v15, %v1083_v15 }
 0x137   : > { %v1056_v21 = vadd.f32 %v1445_v42, %v991_v3  ;;  %v994_v22 = vadd.f32 %v1416_v17, %v1803_v18 }
 0x138   : > { %1124 = vst.msk [vmem:[%s1809_s5 + $0x14] sm:$0xf] %vm1118_vm2, %v1294_v20 }
 0x139   : > { %vm1068_vm8 = vcmp.gt.f32.partialorder %v1056_v21, 0.0  ;;  %v1076_v23 = vmul.f32 0.1, %v1056_v21  ;;  %v1059_v24 = vadd.f32 %v1446_v49, %v994_v22 }
 0x13b   : > { %v1084_v25 = vsel %vm1068_vm8, %v1056_v21, %v1076_v23  ;;  %vm1069_vm9 = vcmp.gt.f32.partialorder %v1059_v24, 0.0  ;;  %v1077_v26 = vmul.f32 0.1, %v1059_v24 }
 0x13c   : > { %v1295_v27 = vpack.c.bf16 %v1084_v25, %v1084_v25 }
 0x13d   : > { %v1085_v28 = vsel %vm1069_vm9, %v1059_v24, %v1077_v26 }
 0x13e   : > { %1125 = vst.msk [vmem:[%s1809_s5 + $0x18] sm:$0xf] %vm1118_vm2, %v1295_v27  ;;  %v1296_v16 = vpack.c.bf16 %v1085_v28, %v1085_v28 }
 0x140   : > { %1126 = vst.msk [vmem:[%s1809_s5 + $0x1c] sm:$0xf] %vm1118_vm2, %v1296_v16 }
 0x141 PF: > { %s13_s12 = sadd.s32 1, %s1556_s12  }
 0x142   : > { %p10_p4 = scmp.ge.s32.totalorder %s13_s12, 4  }
 0x144   :  { %12 = sbr.rel (!%p10_p4) target bundleno = 1 (0x1), region = 62 }

// kernel: _encoder_forward_arrays.5
= control target key start
LH: loop header
LB: loop body
LE: loop exit
PB: predicated region body
PF: predicated region fallthrough
CT: control target
= control target key end

     0   :  { %vm390_vm1 = vcmask 261120   ;;  %s653_s1 = inlined_call_operand.vmem [shape: bf16[512,32], index: 1, kind: input, shape index: {}]   ;;  %s654_s0 = inlined_call_operand.vmem [shape: bf16[16,512], index: 0, kind: input, shape index: {}]   ;;  %s655_s2 = inlined_call_operand.vmem [shape: f32[1,32], index: 2, kind: input, shape index: {}]   ;;  %s656_s3 = inlined_call_operand.vmem [shape: f32[16,32], index: 3, kind: output, shape index: {}]  }
   0x1   :  { %v478_v0 = vld [vmem:[%s653_s1 + $0x40] sm:$0xff]   ;;  %v482_v4 = vld [vmem:[%s653_s1 + $0x48] sm:$0xff]   ;;  %v486_v8 = vld [vmem:[%s653_s1 + $0x50] sm:$0xff]  }
   0x2   :  { %v479_v1 = vld [vmem:[%s653_s1 + $0xc0] sm:$0xff]   ;;  %434 = vmatprep.subr.bf16.mxu0 %v478_v0  ;;  %v483_v5 = vld [vmem:[%s653_s1 + $0xc8] sm:$0xff]   ;;  %v487_v9 = vld [vmem:[%s653_s1 + $0xd0] sm:$0xff]  }
   0x3   :  { %v480_v2 = vld [vmem:[%s653_s1] sm:$0xff]   ;;  %456 = vmatprep.subr.bf16.mxu1 %v479_v1  ;;  %v484_v6 = vld [vmem:[%s653_s1 + $0x8] sm:$0xff]   ;;  %v488_v10 = vld [vmem:[%s653_s1 + $0x10] sm:$0xff]  }
   0x4   :  { %v481_v3 = vld [vmem:[%s653_s1 + $0x80] sm:$0xff]   ;;  %435 = vmatpush3.bf16.msra.mxu0 %v480_v2  ;;  %v485_v7 = vld [vmem:[%s653_s1 + $0x88] sm:$0xff]   ;;  %v489_v11 = vld [vmem:[%s653_s1 + $0x90] sm:$0xff]  }
   0x5   :  { %457 = vmatpush3.bf16.msra.mxu1 %v481_v3  ;;  %436 = vmatprep.subr.bf16.mxu0 %v482_v4  ;;  %v490_v12 = vld [vmem:[%s653_s1 + $0x58] sm:$0xff]   ;;  %v494_v16 = vld [vmem:[%s653_s1 + $0x60] sm:$0xff]   ;;  %v498_v20 = vld [vmem:[%s653_s1 + $0x68] sm:$0xff]  }
   0x6   :  { %458 = vmatprep.subr.bf16.mxu1 %v483_v5  ;;  %v491_v13 = vld [vmem:[%s653_s1 + $0xd8] sm:$0xff]   ;;  %v495_v17 = vld [vmem:[%s653_s1 + $0xe0] sm:$0xff]   ;;  %v499_v21 = vld [vmem:[%s653_s1 + $0xe8] sm:$0xff]  }
   0x7   :  { %v492_v14 = vld [vmem:[%s653_s1 + $0x18] sm:$0xff]   ;;  %v496_v18 = vld [vmem:[%s653_s1 + $0x20] sm:$0xff]   ;;  %v500_v22 = vld [vmem:[%s653_s1 + $0x28] sm:$0xff]  }
   0x8   :  { %437 = vmatpush3.bf16.msra.mxu0 %v484_v6  ;;  %v493_v15 = vld [vmem:[%s653_s1 + $0x98] sm:$0xff]   ;;  %v497_v19 = vld [vmem:[%s653_s1 + $0xa0] sm:$0xff]   ;;  %v501_v23 = vld [vmem:[%s653_s1 + $0xa8] sm:$0xff]  }
   0x9   :  { %459 = vmatpush3.bf16.msra.mxu1 %v485_v7  ;;  %438 = vmatprep.subr.bf16.mxu0 %v486_v8  ;;  %v502_v24 = vld [vmem:[%s653_s1 + $0x70] sm:$0xff]   ;;  %v506_v28 = vld [vmem:[%s653_s1 + $0x78] sm:$0xff]   ;;  %v397_v38 = vld [vmem:[%s655_s2] ss:$0 sm:$0xff] }
   0xa   :  { %460 = vmatprep.subr.bf16.mxu1 %v487_v9  ;;  %v503_v25 = vld [vmem:[%s653_s1 + $0xf0] sm:$0xff]   ;;  %v507_v29 = vld [vmem:[%s653_s1 + $0xf8] sm:$0xff]  }
   0xb   :  { %v504_v26 = vld [vmem:[%s653_s1 + $0x30] sm:$0xff]   ;;  %v508_v30 = vld [vmem:[%s653_s1 + $0x38] sm:$0xff]  }
   0xc   :  { %439 = vmatpush3.bf16.msra.mxu0 %v488_v10  ;;  %v505_v27 = vld [vmem:[%s653_s1 + $0xb0] sm:$0xff]   ;;  %v509_v31 = vld [vmem:[%s653_s1 + $0xb8] sm:$0xff]  }
   0xd   :  { %461 = vmatpush3.bf16.msra.mxu1 %v489_v11  ;;  %440 = vmatprep.subr.bf16.mxu0 %v490_v12  ;;  %v510_v32 = vld [vmem:[%s654_s0] ss:$16 sps:$4 sm:$0xff]   ;;  %v512_v33 = vld [vmem:[%s654_s0 + $0x4] ss:$16 sps:$4 sm:$0xff]   ;;  %v513_v34 = vld [vmem:[%s654_s0 + $0x8] ss:$16 sps:$4 sm:$0xff]  }
   0xe   :  { %462 = vmatprep.subr.bf16.mxu1 %v491_v13  ;;  %v515_v35 = vld [vmem:[%s654_s0 + $0xc] ss:$16 sps:$4 sm:$0xff]   ;;  %334 = vmatprep.mubr.bf16.mxu0 %v512_v33 }
   0xf   :  { %375 = vmatprep.mubr.bf16.mxu1 %v515_v35 }
  0x10   :  { %441 = vmatpush3.bf16.msra.mxu0 %v492_v14 }
  0x11   :  { %463 = vmatpush3.bf16.msra.mxu1 %v493_v15  ;;  %442 = vmatprep.subr.bf16.mxu0 %v494_v16 }
  0x12   :  { %464 = vmatprep.subr.bf16.mxu1 %v495_v17 }
  0x14   :  { %443 = vmatpush3.bf16.msra.mxu0 %v496_v18 }
  0x15   :  { %465 = vmatpush3.bf16.msra.mxu1 %v497_v19  ;;  %444 = vmatprep.subr.bf16.mxu0 %v498_v20 }
  0x16   :  { %466 = vmatprep.subr.bf16.mxu1 %v499_v21 }
  0x18   :  { %445 = vmatpush3.bf16.msra.mxu0 %v500_v22 }
  0x19   :  { %467 = vmatpush3.bf16.msra.mxu1 %v501_v23  ;;  %446 = vmatprep.subr.bf16.mxu0 %v502_v24 }
  0x1a   :  { %468 = vmatprep.subr.bf16.mxu1 %v503_v25 }
  0x1c   :  { %447 = vmatpush3.bf16.msra.mxu0 %v504_v26 }
  0x1d   :  { %469 = vmatpush3.bf16.msra.mxu1 %v505_v27  ;;  %448 = vmatprep.subr.bf16.mxu0 %v506_v28 }
  0x1e   :  { %470 = vmatprep.subr.bf16.mxu1 %v507_v29 }
  0x20   :  { %449 = vmatpush3.bf16.msra.mxu0 %v508_v30 }
  0x21   :  { %471 = vmatpush3.bf16.msra.mxu1 %v509_v31 }
  0x23   :  { %335 = vmatmul.mubr.bf16.vlgmr.msra.gmra.mrb[0].mxu0 %v510_v32 }
  0x24   :  { %376 = vmatmul.mubr.bf16.vlgmr.msra.gmra.mrb[0].mxu1 %v513_v34 }
  0xf6   :  { %v450_v36 = vpop.f32.mrb[0].mxu0 }
  0xf7   :  { %v472_v37 = vpop.f32.mrb[0].mxu1  ;;  %v451_v39 = vpop.f32.mrb[1].mxu0 }
  0xf8   :  { %v452_v40 = vadd.f32 %v451_v39, %v450_v36  ;;  %v473_v41 = vpop.f32.mrb[1].mxu1  ;;  %v453_v42 = vpop.f32.mrb[2].mxu0 }
  0xf9   :  { %v474_v43 = vadd.f32 %v473_v41, %v472_v37  ;;  %v475_v44 = vpop.f32.mrb[2].mxu1  ;;  %v454_v45 = vpop.f32.mrb[3].mxu0 }
  0xfa   :  { %v337_v46 = vadd.f32 %v452_v40, %v397_v38  ;;  %v455_v47 = vadd.f32 %v454_v45, %v453_v42  ;;  %v476_v48 = vpop.f32.mrb[3].mxu1 }
  0xfb   :  { %v477_v49 = vadd.f32 %v476_v48, %v475_v44 }
  0xfc   :  { %v378_v50 = vadd.f32 %v474_v43, %v337_v46  ;;  %v340_v51 = vadd.f32 %v455_v47, %v397_v38 }
  0xfe   :  { %vm384_vm0 = vcmp.gt.f32.partialorder %v378_v50, 0.0  ;;  %v386_v52 = vmul.f32 0.1, %v378_v50  ;;  %v381_v53 = vadd.f32 %v477_v49, %v340_v51 }
 0x100   :  { %v388_v54 = vsel %vm384_vm0, %v378_v50, %v386_v52  ;;  %vm385_vm2 = vcmp.gt.f32.partialorder %v381_v53, 0.0  ;;  %v387_v55 = vmul.f32 0.1, %v381_v53 }
 0x101   :  { %391 = vst.msk [vmem:[%s656_s3] sm:$0xff] %vm390_vm1, %v388_v54 }
 0x102   :  { %v389_v56 = vsel %vm385_vm2, %v381_v53, %v387_v55 }
 0x103   :  { %392 = vst.msk [vmem:[%s656_s3 + $0x8] sm:$0xff] %vm390_vm1, %v389_v56 }

</bundles_post_ra>
